<compile_context>
chip_gen: v7x
topology: tpu7x:2x2x1
jax: 0.10.0
libtpu: 0.0.40
codegen_flags: <defaults>
</compile_context>

<pallas_src>
import functools

import jax
import jax.numpy as jnp
from jax.experimental import pallas as pl
from jax.experimental.pallas import tpu as pltpu


# ----------------------------- fused Pallas kernel --------------------------
def _cnn_fused_kernel(p1_ref, w1_ref, w2_ref, fw1_ref, fw2_ref, b_ref,
                      o_ref, y1_ref, *, batch):
    """Whole CNN forward on VMEM-resident data.

    p1_ref : (256*batch, 64)  conv1 im2col patches, rows (r,s,oi,oj,n), cols (kh,kw)
    w1_ref : (64, 16)         conv1 weight, rows kh*8+kw, cols cout
    w2_ref : (256, 32)        conv2 weight, rows (r*4+s)*16 + cin, cols cout
    fw1_ref: (512, 256)       fc1 weight, rows (oi*4+oj)*32 + cin, cols cout
    fw2_ref: (256, 4)         fc2 weight
    b_ref  : (4, 256)         packed biases: [b1|0], [b2|0], [fb1], [fb2|0]
    o_ref  : (batch, 4)       network output
    y1_ref : (256*batch, 16)  VMEM scratch for the conv1 activation
    """
    nb = batch
    m2 = 16 * nb                                   # conv2 output rows: one per (oi,oj,n)

    # conv1: single (256*nb, 64) @ (64, 16) matmul + bias + ReLU -> scratch.
    b1 = b_ref[0:1, 0:16]
    y1 = jnp.dot(p1_ref[...], w1_ref[...], preferred_element_type=jnp.float32)
    y1_ref[...] = jnp.maximum(y1 + b1, 0.0)

    # conv2: k=4,s=4 is non-overlapping -> accumulate over the 16 kernel positions
    # f=(r,s); each term is a contiguous, 8-aligned row block of y1.
    b2 = b_ref[1:2, 0:32]
    acc2 = jnp.zeros((m2, 32), jnp.float32)
    for f in range(16):
        acc2 = acc2 + jnp.dot(y1_ref[f * m2:(f + 1) * m2, :],
                              w2_ref[f * 16:(f + 1) * 16, :],
                              preferred_element_type=jnp.float32)
    y2 = jnp.maximum(acc2 + b2, 0.0)               # (16*nb, 32), rows (oi,oj,n)

    # fc1: the NCHW flatten order is folded into fw1's row permutation; contract by
    # accumulating over the 16 spatial positions g=(oi,oj).
    fb1 = b_ref[2:3, :]
    acc3 = jnp.zeros((nb, 256), jnp.float32)
    for g in range(16):
        acc3 = acc3 + jnp.dot(y2[g * nb:(g + 1) * nb, :],
                              fw1_ref[g * 32:(g + 1) * 32, :],
                              preferred_element_type=jnp.float32)
    h = jnp.maximum(acc3 + fb1, 0.0)               # (nb, 256)

    # fc2 (no activation).
    fb2 = b_ref[3:4, 0:4]
    out = jnp.dot(h, fw2_ref[...], preferred_element_type=jnp.float32) + fb2
    o_ref[...] = out.astype(o_ref.dtype)


# ------------------------------ JAX glue -------------------------------------
def _conv1_patches(x):
    """x: (N,1,68,68) NCHW -> (256*N, 64) im2col for conv1 (k=8, s=4), gather-free.

    Rows ordered (r, s, oi, oj, n) with conv1 output position (i,j)=(4*oi+r, 4*oj+s);
    columns ordered (kh, kw). Built purely from reshapes + static slices + one small
    transpose of a ~130 KB array (no XLA gathers).
    """
    n = x.shape[0]
    xr = x.reshape(n, 17, 4, 17, 4)                       # [n, hb, sh, wb, sw]
    parts = [xr[:, gh:gh + 16, :, gw:gw + 16, :]          # [n, 4*oi+r, sh, 4*oj+s, sw]
             for gh in (0, 1) for gw in (0, 1)]
    p = jnp.stack(parts, axis=0).reshape(2, 2, n, 16, 4, 16, 4)
    p = p.reshape(2, 2, n, 4, 4, 4, 4, 4, 4)              # [gh,gw,n,oi,r,sh,oj,s,sw]
    p = p.transpose(4, 7, 3, 6, 2, 0, 5, 1, 8)            # [r,s,oi,oj,n,gh,sh,gw,sw]
    return p.reshape(256 * n, 64)                         # col index = kh*8 + kw


def cnn_forward(x, params):
    """Pallas-backed forward matching the PyTorch CNN.forward (x is NCHW (N,1,68,68))."""
    w1, b1, w2, b2, fw1, fb1, fw2, fb2 = params
    nb = x.shape[0]

    # One-time layout prep (tiny): fold every PyTorch ordering into the operands.
    p1 = _conv1_patches(x)                                            # (256*nb, 64)
    w1a = w1.reshape(16, 64).T                                        # (64, 16)
    w2p = w2.transpose(2, 3, 1, 0).reshape(256, 32)                   # rows (r,s,cin)
    fw1p = fw1.reshape(32, 16, 256).transpose(1, 0, 2).reshape(512, 256)  # rows (g,cin)
    bias = jnp.zeros((4, 256), jnp.float32)
    bias = bias.at[0, :16].set(b1).at[1, :32].set(b2)
    bias = bias.at[2, :].set(fb1).at[3, :4].set(fb2)

    flops = 2 * nb * (256 * 64 * 16 + 16 * 16 * 16 * 32 + 16 * 32 * 256 + 256 * 4)
    bytes_accessed = 4 * (p1.size + w1a.size + w2p.size + fw1p.size +
                          fw2.size + bias.size + nb * 4)

    vmem = pltpu.MemorySpace.VMEM
    return pl.pallas_call(
        functools.partial(_cnn_fused_kernel, batch=nb),
        out_shape=jax.ShapeDtypeStruct((nb, 4), jnp.float32),
        in_specs=[pl.BlockSpec(memory_space=vmem)] * 6,
        out_specs=pl.BlockSpec(memory_space=vmem),
        scratch_shapes=[pltpu.VMEM((256 * nb, 16), jnp.float32)],
        cost_estimate=pl.CostEstimate(flops=flops, transcendentals=0,
                                      bytes_accessed=bytes_accessed),
    )(p1, w1a, w2p, fw1p, fw2, bias)


def reference_forward(x, params):
    """Pure-JAX reference (lax.conv) for correctness check."""
    w1, b1, w2, b2, fw1, fb1, fw2, fb2 = params
    dn = ("NCHW", "OIHW", "NCHW")
    y = jax.lax.conv_general_dilated(x, w1, (4, 4), "VALID", dimension_numbers=dn)
    y = jnp.maximum(y + b1[None, :, None, None], 0.0)
    y = jax.lax.conv_general_dilated(y, w2, (4, 4), "VALID", dimension_numbers=dn)
    y = jnp.maximum(y + b2[None, :, None, None], 0.0)
    y = y.reshape(y.shape[0], -1)
    y = jnp.maximum(y @ fw1 + fb1, 0.0)
    return y @ fw2 + fb2


def init_params(key):
    ks = jax.random.split(key, 8)
    w1 = jax.random.normal(ks[0], (16, 1, 8, 8), jnp.float32) * 0.05   # OIHW
    b1 = jax.random.normal(ks[1], (16,), jnp.float32) * 0.05
    w2 = jax.random.normal(ks[2], (32, 16, 4, 4), jnp.float32) * 0.05  # OIHW
    b2 = jax.random.normal(ks[3], (32,), jnp.float32) * 0.05
    fw1 = jax.random.normal(ks[4], (512, 256), jnp.float32) * 0.05     # (in, out)
    fb1 = jax.random.normal(ks[5], (256,), jnp.float32) * 0.05
    fw2 = jax.random.normal(ks[6], (256, 4), jnp.float32) * 0.05       # (in, out)
    fb2 = jax.random.normal(ks[7], (4,), jnp.float32) * 0.05
    return (w1, b1, w2, b2, fw1, fb1, fw2, fb2)


if __name__ == "__main__":
    key = jax.random.PRNGKey(0)
    k_x, k_p = jax.random.split(key)

    # Input: batch=2, 1 channel, 68x68 (spatial size forced by view(-1, 32*4*4)).
    x = jax.random.normal(k_x, (2, 1, 68, 68), jnp.float32)
    params = init_params(k_p)

    out = jax.block_until_ready(jax.jit(cnn_forward)(x, params))
    ref = jax.block_until_ready(reference_forward(x, params))

    assert out.shape == (2, 4), out.shape
    err = float(jnp.max(jnp.abs(out - ref)))
    assert jnp.allclose(out, ref, atol=5e-4, rtol=5e-4), err

    print("KERNEL_OK")
</pallas_src>

<mosaic_0001>
module attributes {stable_mosaic.version = 11 : i64} {
  func.func @_cnn_fused_kernel(%arg0: memref<512x64xf32, #tpu.memory_space<vmem>>, %arg1: memref<64x16xf32, #tpu.memory_space<vmem>>, %arg2: memref<256x32xf32, #tpu.memory_space<vmem>>, %arg3: memref<512x256xf32, #tpu.memory_space<vmem>>, %arg4: memref<256x4xf32, #tpu.memory_space<vmem>>, %arg5: memref<4x256xf32, #tpu.memory_space<vmem>>, %arg6: memref<2x4xf32, #tpu.memory_space<vmem>>, %arg7: memref<512x16xf32, #tpu.memory_space<vmem>>) attributes {dimension_semantics = [], scalar_prefetch = 0 : i64, scratch_operands = 1 : i64, tpu.core_type = #tpu.core_type<tc>} {
    %c0 = arith.constant 0 : index
    %c0_0 = arith.constant 0 : index
    %0 = vector.load %arg5[%c0, %c0_0] : memref<4x256xf32, #tpu.memory_space<vmem>>, vector<1x16xf32>
    %c0_1 = arith.constant 0 : index
    %c0_2 = arith.constant 0 : index
    %1 = vector.load %arg0[%c0_1, %c0_2] : memref<512x64xf32, #tpu.memory_space<vmem>>, vector<512x64xf32>
    %c0_3 = arith.constant 0 : index
    %c0_4 = arith.constant 0 : index
    %2 = vector.load %arg1[%c0_3, %c0_4] : memref<64x16xf32, #tpu.memory_space<vmem>>, vector<64x16xf32>
    %cst = arith.constant dense<0.000000e+00> : vector<512x16xf32>
    %3 = tpu.matmul %1, %2, %cst {dimension_numbers = #tpu.dot_dimension_numbers<[1], [0], [0], [1], [0, 0, 1, 1], [], []>} : vector<512x64xf32>, vector<64x16xf32>, vector<512x16xf32> -> vector<512x16xf32>
    %4 = vector.broadcast %0 : vector<1x16xf32> to vector<512x16xf32>
    %5 = arith.addf %3, %4 : vector<512x16xf32>
    %cst_5 = arith.constant 0.000000e+00 : f32
    %6 = vector.broadcast %cst_5 : f32 to vector<512x16xf32>
    %7 = arith.maximumf %5, %6 : vector<512x16xf32>
    %c0_6 = arith.constant 0 : index
    %c0_7 = arith.constant 0 : index
    %8 = vector.load %arg7[%c0_6, %c0_7] : memref<512x16xf32, #tpu.memory_space<vmem>>, vector<512x16xf32>
    tpu.vector_store %arg7[%c0_6, %c0_7], %7 {strides = array<i32>} : memref<512x16xf32, #tpu.memory_space<vmem>>, vector<512x16xf32>,
    %c1 = arith.constant 1 : index
    %c0_8 = arith.constant 0 : index
    %9 = vector.load %arg5[%c1, %c0_8] : memref<4x256xf32, #tpu.memory_space<vmem>>, vector<1x32xf32>
    %cst_9 = arith.constant 0.000000e+00 : f32
    %10 = vector.broadcast %cst_9 : f32 to vector<32x32xf32>
    %c0_10 = arith.constant 0 : index
    %c0_11 = arith.constant 0 : index
    %11 = vector.load %arg7[%c0_10, %c0_11] : memref<512x16xf32, #tpu.memory_space<vmem>>, vector<32x16xf32>
    %c0_12 = arith.constant 0 : index
    %c0_13 = arith.constant 0 : index
    %12 = vector.load %arg2[%c0_12, %c0_13] : memref<256x32xf32, #tpu.memory_space<vmem>>, vector<16x32xf32>
    %cst_14 = arith.constant dense<0.000000e+00> : vector<32x32xf32>
    %13 = tpu.matmul %11, %12, %cst_14 {dimension_numbers = #tpu.dot_dimension_numbers<[1], [0], [0], [1], [0, 0, 1, 1], [], []>} : vector<32x16xf32>, vector<16x32xf32>, vector<32x32xf32> -> vector<32x32xf32>
    %14 = arith.addf %10, %13 : vector<32x32xf32>
    %c32 = arith.constant 32 : index
    %c0_15 = arith.constant 0 : index
    %15 = vector.load %arg7[%c32, %c0_15] : memref<512x16xf32, #tpu.memory_space<vmem>>, vector<32x16xf32>
    %c16 = arith.constant 16 : index
    %c0_16 = arith.constant 0 : index
    %16 = vector.load %arg2[%c16, %c0_16] : memref<256x32xf32, #tpu.memory_space<vmem>>, vector<16x32xf32>
    %cst_17 = arith.constant dense<0.000000e+00> : vector<32x32xf32>
    %17 = tpu.matmul %15, %16, %cst_17 {dimension_numbers = #tpu.dot_dimension_numbers<[1], [0], [0], [1], [0, 0, 1, 1], [], []>} : vector<32x16xf32>, vector<16x32xf32>, vector<32x32xf32> -> vector<32x32xf32>
    %18 = arith.addf %14, %17 : vector<32x32xf32>
    %c64 = arith.constant 64 : index
    %c0_18 = arith.constant 0 : index
    %19 = vector.load %arg7[%c64, %c0_18] : memref<512x16xf32, #tpu.memory_space<vmem>>, vector<32x16xf32>
    %c32_19 = arith.constant 32 : index
    %c0_20 = arith.constant 0 : index
    %20 = vector.load %arg2[%c32_19, %c0_20] : memref<256x32xf32, #tpu.memory_space<vmem>>, vector<16x32xf32>
    %cst_21 = arith.constant dense<0.000000e+00> : vector<32x32xf32>
    %21 = tpu.matmul %19, %20, %cst_21 {dimension_numbers = #tpu.dot_dimension_numbers<[1], [0], [0], [1], [0, 0, 1, 1], [], []>} : vector<32x16xf32>, vector<16x32xf32>, vector<32x32xf32> -> vector<32x32xf32>
    %22 = arith.addf %18, %21 : vector<32x32xf32>
    %c96 = arith.constant 96 : index
    %c0_22 = arith.constant 0 : index
    %23 = vector.load %arg7[%c96, %c0_22] : memref<512x16xf32, #tpu.memory_space<vmem>>, vector<32x16xf32>
    %c48 = arith.constant 48 : index
    %c0_23 = arith.constant 0 : index
    %24 = vector.load %arg2[%c48, %c0_23] : memref<256x32xf32, #tpu.memory_space<vmem>>, vector<16x32xf32>
    %cst_24 = arith.constant dense<0.000000e+00> : vector<32x32xf32>
    %25 = tpu.matmul %23, %24, %cst_24 {dimension_numbers = #tpu.dot_dimension_numbers<[1], [0], [0], [1], [0, 0, 1, 1], [], []>} : vector<32x16xf32>, vector<16x32xf32>, vector<32x32xf32> -> vector<32x32xf32>
    %26 = arith.addf %22, %25 : vector<32x32xf32>
    %c128 = arith.constant 128 : index
    %c0_25 = arith.constant 0 : index
    %27 = vector.load %arg7[%c128, %c0_25] : memref<512x16xf32, #tpu.memory_space<vmem>>, vector<32x16xf32>
    %c64_26 = arith.constant 64 : index
    %c0_27 = arith.constant 0 : index
    %28 = vector.load %arg2[%c64_26, %c0_27] : memref<256x32xf32, #tpu.memory_space<vmem>>, vector<16x32xf32>
    %cst_28 = arith.constant dense<0.000000e+00> : vector<32x32xf32>
    %29 = tpu.matmul %27, %28, %cst_28 {dimension_numbers = #tpu.dot_dimension_numbers<[1], [0], [0], [1], [0, 0, 1, 1], [], []>} : vector<32x16xf32>, vector<16x32xf32>, vector<32x32xf32> -> vector<32x32xf32>
    %30 = arith.addf %26, %29 : vector<32x32xf32>
    %c160 = arith.constant 160 : index
    %c0_29 = arith.constant 0 : index
    %31 = vector.load %arg7[%c160, %c0_29] : memref<512x16xf32, #tpu.memory_space<vmem>>, vector<32x16xf32>
    %c80 = arith.constant 80 : index
    %c0_30 = arith.constant 0 : index
    %32 = vector.load %arg2[%c80, %c0_30] : memref<256x32xf32, #tpu.memory_space<vmem>>, vector<16x32xf32>
    %cst_31 = arith.constant dense<0.000000e+00> : vector<32x32xf32>
    %33 = tpu.matmul %31, %32, %cst_31 {dimension_numbers = #tpu.dot_dimension_numbers<[1], [0], [0], [1], [0, 0, 1, 1], [], []>} : vector<32x16xf32>, vector<16x32xf32>, vector<32x32xf32> -> vector<32x32xf32>
    %34 = arith.addf %30, %33 : vector<32x32xf32>
    %c192 = arith.constant 192 : index
    %c0_32 = arith.constant 0 : index
    %35 = vector.load %arg7[%c192, %c0_32] : memref<512x16xf32, #tpu.memory_space<vmem>>, vector<32x16xf32>
    %c96_33 = arith.constant 96 : index
    %c0_34 = arith.constant 0 : index
    %36 = vector.load %arg2[%c96_33, %c0_34] : memref<256x32xf32, #tpu.memory_space<vmem>>, vector<16x32xf32>
    %cst_35 = arith.constant dense<0.000000e+00> : vector<32x32xf32>
    %37 = tpu.matmul %35, %36, %cst_35 {dimension_numbers = #tpu.dot_dimension_numbers<[1], [0], [0], [1], [0, 0, 1, 1], [], []>} : vector<32x16xf32>, vector<16x32xf32>, vector<32x32xf32> -> vector<32x32xf32>
    %38 = arith.addf %34, %37 : vector<32x32xf32>
    %c224 = arith.constant 224 : index
    %c0_36 = arith.constant 0 : index
    %39 = vector.load %arg7[%c224, %c0_36] : memref<512x16xf32, #tpu.memory_space<vmem>>, vector<32x16xf32>
    %c112 = arith.constant 112 : index
    %c0_37 = arith.constant 0 : index
    %40 = vector.load %arg2[%c112, %c0_37] : memref<256x32xf32, #tpu.memory_space<vmem>>, vector<16x32xf32>
    %cst_38 = arith.constant dense<0.000000e+00> : vector<32x32xf32>
    %41 = tpu.matmul %39, %40, %cst_38 {dimension_numbers = #tpu.dot_dimension_numbers<[1], [0], [0], [1], [0, 0, 1, 1], [], []>} : vector<32x16xf32>, vector<16x32xf32>, vector<32x32xf32> -> vector<32x32xf32>
    %42 = arith.addf %38, %41 : vector<32x32xf32>
    %c256 = arith.constant 256 : index
    %c0_39 = arith.constant 0 : index
    %43 = vector.load %arg7[%c256, %c0_39] : memref<512x16xf32, #tpu.memory_space<vmem>>, vector<32x16xf32>
    %c128_40 = arith.constant 128 : index
    %c0_41 = arith.constant 0 : index
    %44 = vector.load %arg2[%c128_40, %c0_41] : memref<256x32xf32, #tpu.memory_space<vmem>>, vector<16x32xf32>
    %cst_42 = arith.constant dense<0.000000e+00> : vector<32x32xf32>
    %45 = tpu.matmul %43, %44, %cst_42 {dimension_numbers = #tpu.dot_dimension_numbers<[1], [0], [0], [1], [0, 0, 1, 1], [], []>} : vector<32x16xf32>, vector<16x32xf32>, vector<32x32xf32> -> vector<32x32xf32>
    %46 = arith.addf %42, %45 : vector<32x32xf32>
    %c288 = arith.constant 288 : index
    %c0_43 = arith.constant 0 : index
    %47 = vector.load %arg7[%c288, %c0_43] : memref<512x16xf32, #tpu.memory_space<vmem>>, vector<32x16xf32>
    %c144 = arith.constant 144 : index
    %c0_44 = arith.constant 0 : index
    %48 = vector.load %arg2[%c144, %c0_44] : memref<256x32xf32, #tpu.memory_space<vmem>>, vector<16x32xf32>
    %cst_45 = arith.constant dense<0.000000e+00> : vector<32x32xf32>
    %49 = tpu.matmul %47, %48, %cst_45 {dimension_numbers = #tpu.dot_dimension_numbers<[1], [0], [0], [1], [0, 0, 1, 1], [], []>} : vector<32x16xf32>, vector<16x32xf32>, vector<32x32xf32> -> vector<32x32xf32>
    %50 = arith.addf %46, %49 : vector<32x32xf32>
    %c320 = arith.constant 320 : index
    %c0_46 = arith.constant 0 : index
    %51 = vector.load %arg7[%c320, %c0_46] : memref<512x16xf32, #tpu.memory_space<vmem>>, vector<32x16xf32>
    %c160_47 = arith.constant 160 : index
    %c0_48 = arith.constant 0 : index
    %52 = vector.load %arg2[%c160_47, %c0_48] : memref<256x32xf32, #tpu.memory_space<vmem>>, vector<16x32xf32>
    %cst_49 = arith.constant dense<0.000000e+00> : vector<32x32xf32>
    %53 = tpu.matmul %51, %52, %cst_49 {dimension_numbers = #tpu.dot_dimension_numbers<[1], [0], [0], [1], [0, 0, 1, 1], [], []>} : vector<32x16xf32>, vector<16x32xf32>, vector<32x32xf32> -> vector<32x32xf32>
    %54 = arith.addf %50, %53 : vector<32x32xf32>
    %c352 = arith.constant 352 : index
    %c0_50 = arith.constant 0 : index
    %55 = vector.load %arg7[%c352, %c0_50] : memref<512x16xf32, #tpu.memory_space<vmem>>, vector<32x16xf32>
    %c176 = arith.constant 176 : index
    %c0_51 = arith.constant 0 : index
    %56 = vector.load %arg2[%c176, %c0_51] : memref<256x32xf32, #tpu.memory_space<vmem>>, vector<16x32xf32>
    %cst_52 = arith.constant dense<0.000000e+00> : vector<32x32xf32>
    %57 = tpu.matmul %55, %56, %cst_52 {dimension_numbers = #tpu.dot_dimension_numbers<[1], [0], [0], [1], [0, 0, 1, 1], [], []>} : vector<32x16xf32>, vector<16x32xf32>, vector<32x32xf32> -> vector<32x32xf32>
    %58 = arith.addf %54, %57 : vector<32x32xf32>
    %c384 = arith.constant 384 : index
    %c0_53 = arith.constant 0 : index
    %59 = vector.load %arg7[%c384, %c0_53] : memref<512x16xf32, #tpu.memory_space<vmem>>, vector<32x16xf32>
    %c192_54 = arith.constant 192 : index
    %c0_55 = arith.constant 0 : index
    %60 = vector.load %arg2[%c192_54, %c0_55] : memref<256x32xf32, #tpu.memory_space<vmem>>, vector<16x32xf32>
    %cst_56 = arith.constant dense<0.000000e+00> : vector<32x32xf32>
    %61 = tpu.matmul %59, %60, %cst_56 {dimension_numbers = #tpu.dot_dimension_numbers<[1], [0], [0], [1], [0, 0, 1, 1], [], []>} : vector<32x16xf32>, vector<16x32xf32>, vector<32x32xf32> -> vector<32x32xf32>
    %62 = arith.addf %58, %61 : vector<32x32xf32>
    %c416 = arith.constant 416 : index
    %c0_57 = arith.constant 0 : index
    %63 = vector.load %arg7[%c416, %c0_57] : memref<512x16xf32, #tpu.memory_space<vmem>>, vector<32x16xf32>
    %c208 = arith.constant 208 : index
    %c0_58 = arith.constant 0 : index
    %64 = vector.load %arg2[%c208, %c0_58] : memref<256x32xf32, #tpu.memory_space<vmem>>, vector<16x32xf32>
    %cst_59 = arith.constant dense<0.000000e+00> : vector<32x32xf32>
    %65 = tpu.matmul %63, %64, %cst_59 {dimension_numbers = #tpu.dot_dimension_numbers<[1], [0], [0], [1], [0, 0, 1, 1], [], []>} : vector<32x16xf32>, vector<16x32xf32>, vector<32x32xf32> -> vector<32x32xf32>
    %66 = arith.addf %62, %65 : vector<32x32xf32>
    %c448 = arith.constant 448 : index
    %c0_60 = arith.constant 0 : index
    %67 = vector.load %arg7[%c448, %c0_60] : memref<512x16xf32, #tpu.memory_space<vmem>>, vector<32x16xf32>
    %c224_61 = arith.constant 224 : index
    %c0_62 = arith.constant 0 : index
    %68 = vector.load %arg2[%c224_61, %c0_62] : memref<256x32xf32, #tpu.memory_space<vmem>>, vector<16x32xf32>
    %cst_63 = arith.constant dense<0.000000e+00> : vector<32x32xf32>
    %69 = tpu.matmul %67, %68, %cst_63 {dimension_numbers = #tpu.dot_dimension_numbers<[1], [0], [0], [1], [0, 0, 1, 1], [], []>} : vector<32x16xf32>, vector<16x32xf32>, vector<32x32xf32> -> vector<32x32xf32>
    %70 = arith.addf %66, %69 : vector<32x32xf32>
    %c480 = arith.constant 480 : index
    %c0_64 = arith.constant 0 : index
    %71 = vector.load %arg7[%c480, %c0_64] : memref<512x16xf32, #tpu.memory_space<vmem>>, vector<32x16xf32>
    %c240 = arith.constant 240 : index
    %c0_65 = arith.constant 0 : index
    %72 = vector.load %arg2[%c240, %c0_65] : memref<256x32xf32, #tpu.memory_space<vmem>>, vector<16x32xf32>
    %cst_66 = arith.constant dense<0.000000e+00> : vector<32x32xf32>
    %73 = tpu.matmul %71, %72, %cst_66 {dimension_numbers = #tpu.dot_dimension_numbers<[1], [0], [0], [1], [0, 0, 1, 1], [], []>} : vector<32x16xf32>, vector<16x32xf32>, vector<32x32xf32> -> vector<32x32xf32>
    %74 = arith.addf %70, %73 : vector<32x32xf32>
    %75 = vector.broadcast %9 : vector<1x32xf32> to vector<32x32xf32>
    %76 = arith.addf %74, %75 : vector<32x32xf32>
    %cst_67 = arith.constant 0.000000e+00 : f32
    %77 = vector.broadcast %cst_67 : f32 to vector<32x32xf32>
    %78 = arith.maximumf %76, %77 : vector<32x32xf32>
    %c2 = arith.constant 2 : index
    %c0_68 = arith.constant 0 : index
    %79 = vector.load %arg5[%c2, %c0_68] : memref<4x256xf32, #tpu.memory_space<vmem>>, vector<1x256xf32>
    %cst_69 = arith.constant 0.000000e+00 : f32
    %80 = vector.broadcast %cst_69 : f32 to vector<2x256xf32>
    %81 = vector.extract_strided_slice %78 {offsets = [0, 0], sizes = [2, 32], strides = [1, 1]} : vector<32x32xf32> to vector<2x32xf32>
    %c0_70 = arith.constant 0 : index
    %c0_71 = arith.constant 0 : index
    %82 = vector.load %arg3[%c0_70, %c0_71] : memref<512x256xf32, #tpu.memory_space<vmem>>, vector<32x256xf32>
    %cst_72 = arith.constant dense<0.000000e+00> : vector<2x256xf32>
    %83 = tpu.matmul %81, %82, %cst_72 {dimension_numbers = #tpu.dot_dimension_numbers<[1], [0], [0], [1], [0, 0, 1, 1], [], []>} : vector<2x32xf32>, vector<32x256xf32>, vector<2x256xf32> -> vector<2x256xf32>
    %84 = arith.addf %80, %83 : vector<2x256xf32>
    %85 = vector.extract_strided_slice %78 {offsets = [2, 0], sizes = [2, 32], strides = [1, 1]} : vector<32x32xf32> to vector<2x32xf32>
    %c32_73 = arith.constant 32 : index
    %c0_74 = arith.constant 0 : index
    %86 = vector.load %arg3[%c32_73, %c0_74] : memref<512x256xf32, #tpu.memory_space<vmem>>, vector<32x256xf32>
    %cst_75 = arith.constant dense<0.000000e+00> : vector<2x256xf32>
    %87 = tpu.matmul %85, %86, %cst_75 {dimension_numbers = #tpu.dot_dimension_numbers<[1], [0], [0], [1], [0, 0, 1, 1], [], []>} : vector<2x32xf32>, vector<32x256xf32>, vector<2x256xf32> -> vector<2x256xf32>
    %88 = arith.addf %84, %87 : vector<2x256xf32>
    %89 = vector.extract_strided_slice %78 {offsets = [4, 0], sizes = [2, 32], strides = [1, 1]} : vector<32x32xf32> to vector<2x32xf32>
    %c64_76 = arith.constant 64 : index
    %c0_77 = arith.constant 0 : index
    %90 = vector.load %arg3[%c64_76, %c0_77] : memref<512x256xf32, #tpu.memory_space<vmem>>, vector<32x256xf32>
    %cst_78 = arith.constant dense<0.000000e+00> : vector<2x256xf32>
    %91 = tpu.matmul %89, %90, %cst_78 {dimension_numbers = #tpu.dot_dimension_numbers<[1], [0], [0], [1], [0, 0, 1, 1], [], []>} : vector<2x32xf32>, vector<32x256xf32>, vector<2x256xf32> -> vector<2x256xf32>
    %92 = arith.addf %88, %91 : vector<2x256xf32>
    %93 = vector.extract_strided_slice %78 {offsets = [6, 0], sizes = [2, 32], strides = [1, 1]} : vector<32x32xf32> to vector<2x32xf32>
    %c96_79 = arith.constant 96 : index
    %c0_80 = arith.constant 0 : index
    %94 = vector.load %arg3[%c96_79, %c0_80] : memref<512x256xf32, #tpu.memory_space<vmem>>, vector<32x256xf32>
    %cst_81 = arith.constant dense<0.000000e+00> : vector<2x256xf32>
    %95 = tpu.matmul %93, %94, %cst_81 {dimension_numbers = #tpu.dot_dimension_numbers<[1], [0], [0], [1], [0, 0, 1, 1], [], []>} : vector<2x32xf32>, vector<32x256xf32>, vector<2x256xf32> -> vector<2x256xf32>
    %96 = arith.addf %92, %95 : vector<2x256xf32>
    %97 = vector.extract_strided_slice %78 {offsets = [8, 0], sizes = [2, 32], strides = [1, 1]} : vector<32x32xf32> to vector<2x32xf32>
    %c128_82 = arith.constant 128 : index
    %c0_83 = arith.constant 0 : index
    %98 = vector.load %arg3[%c128_82, %c0_83] : memref<512x256xf32, #tpu.memory_space<vmem>>, vector<32x256xf32>
    %cst_84 = arith.constant dense<0.000000e+00> : vector<2x256xf32>
    %99 = tpu.matmul %97, %98, %cst_84 {dimension_numbers = #tpu.dot_dimension_numbers<[1], [0], [0], [1], [0, 0, 1, 1], [], []>} : vector<2x32xf32>, vector<32x256xf32>, vector<2x256xf32> -> vector<2x256xf32>
    %100 = arith.addf %96, %99 : vector<2x256xf32>
    %101 = vector.extract_strided_slice %78 {offsets = [10, 0], sizes = [2, 32], strides = [1, 1]} : vector<32x32xf32> to vector<2x32xf32>
    %c160_85 = arith.constant 160 : index
    %c0_86 = arith.constant 0 : index
    %102 = vector.load %arg3[%c160_85, %c0_86] : memref<512x256xf32, #tpu.memory_space<vmem>>, vector<32x256xf32>
    %cst_87 = arith.constant dense<0.000000e+00> : vector<2x256xf32>
    %103 = tpu.matmul %101, %102, %cst_87 {dimension_numbers = #tpu.dot_dimension_numbers<[1], [0], [0], [1], [0, 0, 1, 1], [], []>} : vector<2x32xf32>, vector<32x256xf32>, vector<2x256xf32> -> vector<2x256xf32>
    %104 = arith.addf %100, %103 : vector<2x256xf32>
    %105 = vector.extract_strided_slice %78 {offsets = [12, 0], sizes = [2, 32], strides = [1, 1]} : vector<32x32xf32> to vector<2x32xf32>
    %c192_88 = arith.constant 192 : index
    %c0_89 = arith.constant 0 : index
    %106 = vector.load %arg3[%c192_88, %c0_89] : memref<512x256xf32, #tpu.memory_space<vmem>>, vector<32x256xf32>
    %cst_90 = arith.constant dense<0.000000e+00> : vector<2x256xf32>
    %107 = tpu.matmul %105, %106, %cst_90 {dimension_numbers = #tpu.dot_dimension_numbers<[1], [0], [0], [1], [0, 0, 1, 1], [], []>} : vector<2x32xf32>, vector<32x256xf32>, vector<2x256xf32> -> vector<2x256xf32>
    %108 = arith.addf %104, %107 : vector<2x256xf32>
    %109 = vector.extract_strided_slice %78 {offsets = [14, 0], sizes = [2, 32], strides = [1, 1]} : vector<32x32xf32> to vector<2x32xf32>
    %c224_91 = arith.constant 224 : index
    %c0_92 = arith.constant 0 : index
    %110 = vector.load %arg3[%c224_91, %c0_92] : memref<512x256xf32, #tpu.memory_space<vmem>>, vector<32x256xf32>
    %cst_93 = arith.constant dense<0.000000e+00> : vector<2x256xf32>
    %111 = tpu.matmul %109, %110, %cst_93 {dimension_numbers = #tpu.dot_dimension_numbers<[1], [0], [0], [1], [0, 0, 1, 1], [], []>} : vector<2x32xf32>, vector<32x256xf32>, vector<2x256xf32> -> vector<2x256xf32>
    %112 = arith.addf %108, %111 : vector<2x256xf32>
    %113 = vector.extract_strided_slice %78 {offsets = [16, 0], sizes = [2, 32], strides = [1, 1]} : vector<32x32xf32> to vector<2x32xf32>
    %c256_94 = arith.constant 256 : index
    %c0_95 = arith.constant 0 : index
    %114 = vector.load %arg3[%c256_94, %c0_95] : memref<512x256xf32, #tpu.memory_space<vmem>>, vector<32x256xf32>
    %cst_96 = arith.constant dense<0.000000e+00> : vector<2x256xf32>
    %115 = tpu.matmul %113, %114, %cst_96 {dimension_numbers = #tpu.dot_dimension_numbers<[1], [0], [0], [1], [0, 0, 1, 1], [], []>} : vector<2x32xf32>, vector<32x256xf32>, vector<2x256xf32> -> vector<2x256xf32>
    %116 = arith.addf %112, %115 : vector<2x256xf32>
    %117 = vector.extract_strided_slice %78 {offsets = [18, 0], sizes = [2, 32], strides = [1, 1]} : vector<32x32xf32> to vector<2x32xf32>
    %c288_97 = arith.constant 288 : index
    %c0_98 = arith.constant 0 : index
    %118 = vector.load %arg3[%c288_97, %c0_98] : memref<512x256xf32, #tpu.memory_space<vmem>>, vector<32x256xf32>
    %cst_99 = arith.constant dense<0.000000e+00> : vector<2x256xf32>
    %119 = tpu.matmul %117, %118, %cst_99 {dimension_numbers = #tpu.dot_dimension_numbers<[1], [0], [0], [1], [0, 0, 1, 1], [], []>} : vector<2x32xf32>, vector<32x256xf32>, vector<2x256xf32> -> vector<2x256xf32>
    %120 = arith.addf %116, %119 : vector<2x256xf32>
    %121 = vector.extract_strided_slice %78 {offsets = [20, 0], sizes = [2, 32], strides = [1, 1]} : vector<32x32xf32> to vector<2x32xf32>
    %c320_100 = arith.constant 320 : index
    %c0_101 = arith.constant 0 : index
    %122 = vector.load %arg3[%c320_100, %c0_101] : memref<512x256xf32, #tpu.memory_space<vmem>>, vector<32x256xf32>
    %cst_102 = arith.constant dense<0.000000e+00> : vector<2x256xf32>
    %123 = tpu.matmul %121, %122, %cst_102 {dimension_numbers = #tpu.dot_dimension_numbers<[1], [0], [0], [1], [0, 0, 1, 1], [], []>} : vector<2x32xf32>, vector<32x256xf32>, vector<2x256xf32> -> vector<2x256xf32>
    %124 = arith.addf %120, %123 : vector<2x256xf32>
    %125 = vector.extract_strided_slice %78 {offsets = [22, 0], sizes = [2, 32], strides = [1, 1]} : vector<32x32xf32> to vector<2x32xf32>
    %c352_103 = arith.constant 352 : index
    %c0_104 = arith.constant 0 : index
    %126 = vector.load %arg3[%c352_103, %c0_104] : memref<512x256xf32, #tpu.memory_space<vmem>>, vector<32x256xf32>
    %cst_105 = arith.constant dense<0.000000e+00> : vector<2x256xf32>
    %127 = tpu.matmul %125, %126, %cst_105 {dimension_numbers = #tpu.dot_dimension_numbers<[1], [0], [0], [1], [0, 0, 1, 1], [], []>} : vector<2x32xf32>, vector<32x256xf32>, vector<2x256xf32> -> vector<2x256xf32>
    %128 = arith.addf %124, %127 : vector<2x256xf32>
    %129 = vector.extract_strided_slice %78 {offsets = [24, 0], sizes = [2, 32], strides = [1, 1]} : vector<32x32xf32> to vector<2x32xf32>
    %c384_106 = arith.constant 384 : index
    %c0_107 = arith.constant 0 : index
    %130 = vector.load %arg3[%c384_106, %c0_107] : memref<512x256xf32, #tpu.memory_space<vmem>>, vector<32x256xf32>
    %cst_108 = arith.constant dense<0.000000e+00> : vector<2x256xf32>
    %131 = tpu.matmul %129, %130, %cst_108 {dimension_numbers = #tpu.dot_dimension_numbers<[1], [0], [0], [1], [0, 0, 1, 1], [], []>} : vector<2x32xf32>, vector<32x256xf32>, vector<2x256xf32> -> vector<2x256xf32>
    %132 = arith.addf %128, %131 : vector<2x256xf32>
    %133 = vector.extract_strided_slice %78 {offsets = [26, 0], sizes = [2, 32], strides = [1, 1]} : vector<32x32xf32> to vector<2x32xf32>
    %c416_109 = arith.constant 416 : index
    %c0_110 = arith.constant 0 : index
    %134 = vector.load %arg3[%c416_109, %c0_110] : memref<512x256xf32, #tpu.memory_space<vmem>>, vector<32x256xf32>
    %cst_111 = arith.constant dense<0.000000e+00> : vector<2x256xf32>
    %135 = tpu.matmul %133, %134, %cst_111 {dimension_numbers = #tpu.dot_dimension_numbers<[1], [0], [0], [1], [0, 0, 1, 1], [], []>} : vector<2x32xf32>, vector<32x256xf32>, vector<2x256xf32> -> vector<2x256xf32>
    %136 = arith.addf %132, %135 : vector<2x256xf32>
    %137 = vector.extract_strided_slice %78 {offsets = [28, 0], sizes = [2, 32], strides = [1, 1]} : vector<32x32xf32> to vector<2x32xf32>
    %c448_112 = arith.constant 448 : index
    %c0_113 = arith.constant 0 : index
    %138 = vector.load %arg3[%c448_112, %c0_113] : memref<512x256xf32, #tpu.memory_space<vmem>>, vector<32x256xf32>
    %cst_114 = arith.constant dense<0.000000e+00> : vector<2x256xf32>
    %139 = tpu.matmul %137, %138, %cst_114 {dimension_numbers = #tpu.dot_dimension_numbers<[1], [0], [0], [1], [0, 0, 1, 1], [], []>} : vector<2x32xf32>, vector<32x256xf32>, vector<2x256xf32> -> vector<2x256xf32>
    %140 = arith.addf %136, %139 : vector<2x256xf32>
    %141 = vector.extract_strided_slice %78 {offsets = [30, 0], sizes = [2, 32], strides = [1, 1]} : vector<32x32xf32> to vector<2x32xf32>
    %c480_115 = arith.constant 480 : index
    %c0_116 = arith.constant 0 : index
    %142 = vector.load %arg3[%c480_115, %c0_116] : memref<512x256xf32, #tpu.memory_space<vmem>>, vector<32x256xf32>
    %cst_117 = arith.constant dense<0.000000e+00> : vector<2x256xf32>
    %143 = tpu.matmul %141, %142, %cst_117 {dimension_numbers = #tpu.dot_dimension_numbers<[1], [0], [0], [1], [0, 0, 1, 1], [], []>} : vector<2x32xf32>, vector<32x256xf32>, vector<2x256xf32> -> vector<2x256xf32>
    %144 = arith.addf %140, %143 : vector<2x256xf32>
    %145 = vector.broadcast %79 : vector<1x256xf32> to vector<2x256xf32>
    %146 = arith.addf %144, %145 : vector<2x256xf32>
    %cst_118 = arith.constant 0.000000e+00 : f32
    %147 = vector.broadcast %cst_118 : f32 to vector<2x256xf32>
    %148 = arith.maximumf %146, %147 : vector<2x256xf32>
    %c3 = arith.constant 3 : index
    %c0_119 = arith.constant 0 : index
    %149 = vector.load %arg5[%c3, %c0_119] : memref<4x256xf32, #tpu.memory_space<vmem>>, vector<1x4xf32>
    %c0_120 = arith.constant 0 : index
    %c0_121 = arith.constant 0 : index
    %150 = vector.load %arg4[%c0_120, %c0_121] : memref<256x4xf32, #tpu.memory_space<vmem>>, vector<256x4xf32>
    %cst_122 = arith.constant dense<0.000000e+00> : vector<2x4xf32>
    %151 = tpu.matmul %148, %150, %cst_122 {dimension_numbers = #tpu.dot_dimension_numbers<[1], [0], [0], [1], [0, 0, 1, 1], [], []>} : vector<2x256xf32>, vector<256x4xf32>, vector<2x4xf32> -> vector<2x4xf32>
    %152 = vector.broadcast %149 : vector<1x4xf32> to vector<2x4xf32>
    %153 = arith.addf %151, %152 : vector<2x4xf32>
    %c0_123 = arith.constant 0 : index
    %c0_124 = arith.constant 0 : index
    %154 = vector.load %arg6[%c0_123, %c0_124] : memref<2x4xf32, #tpu.memory_space<vmem>>, vector<2x4xf32>
    tpu.vector_store %arg6[%c0_123, %c0_124], %153 {strides = array<i32>} : memref<2x4xf32, #tpu.memory_space<vmem>>, vector<2x4xf32>,
    return
  }
}

</mosaic_0001>

<bundles_post_ra>
// kernel: cnn_forward.1
= control target key start
LH: loop header
LB: loop body
LE: loop exit
PB: predicated region body
PF: predicated region fallthrough
CT: control target
= control target key end

     0   :  { %vm101_vm0 = vcmask 523264   ;;  %s6169_s0 = inlined_call_operand.vmem [shape: f32[512,64], index: 0, kind: input, shape index: {}]   ;;  %s6170_s1 = inlined_call_operand.vmem [shape: f32[64,16], index: 1, kind: input, shape index: {}]   ;;  %s6171_s2 = inlined_call_operand.vmem [shape: f32[256,32], index: 2, kind: input, shape index: {}]   ;;  %s6172_s3 = inlined_call_operand.vmem [shape: f32[512,256], index: 3, kind: input, shape index: {}]   ;;  %s6173_s4 = inlined_call_operand.vmem [shape: f32[256,4], index: 4, kind: input, shape index: {}]   ;;  %s6174_s5 = inlined_call_operand.vmem [shape: f32[4,256], index: 5, kind: input, shape index: {}]   ;;  %s6175_s6 = inlined_call_operand.hbm [shape: f32[2,4], index: 6, kind: output, shape index: {}]  }
   0x1   :  { %v89_v0 = vld [vmem:[%s6170_s1] sm:$0xff]  ;;  %v90_v1 = vld [vmem:[%s6170_s1 + $0x8] sm:$0xff]  ;;  %v91_v2 = vld [vmem:[%s6170_s1 + $0x10] sm:$0xff] }
   0x2   :  { %v4629_v3 = vpack.c.bf16 %v90_v1, %v89_v0  ;;  %v92_v4 = vld [vmem:[%s6170_s1 + $0x18] sm:$0xff]  ;;  %v93_v6 = vld [vmem:[%s6170_s1 + $0x20] sm:$0xff]  ;;  %v94_v7 = vld [vmem:[%s6170_s1 + $0x28] sm:$0xff] }
   0x3   :  { %v4633_v5 = vpack.c.bf16 %v92_v4, %v91_v2  ;;  %v25_v8 = vld [vmem:[%s6169_s0] sm:$0xff]  ;;  %v4637_v9 = vpack.c.bf16 %v94_v7, %v93_v6  ;;  %v95_v10 = vld [vmem:[%s6170_s1 + $0x30] sm:$0xff]  ;;  %v96_v11 = vld [vmem:[%s6170_s1 + $0x38] sm:$0xff] }
   0x4   :  { %4630 = vmatprep.subr.bf16.mxu0 %v4629_v3  ;;  %4373 = vmatprep.mubr.msk.f32.mxu0 %vm101_vm0, %v25_v8  ;;  %v4641_v12 = vpack.c.bf16 %v96_v11, %v95_v10  ;;  %v26_v13 = vld [vmem:[%s6169_s0 + $0x8] sm:$0xff]  ;;  %v27_v14 = vld [vmem:[%s6169_s0 + $0x10] sm:$0xff]  ;;  %v28_v15 = vld [vmem:[%s6169_s0 + $0x18] sm:$0xff] }
   0x5   :  { %4632 = vmatpush3.bf16.msra.mxu0 %v4629_v3  ;;  %v29_v16 = vld [vmem:[%s6169_s0 + $0x20] sm:$0xff]  ;;  %v30_v17 = vld [vmem:[%s6169_s0 + $0x28] sm:$0xff]  ;;  %v819_v18 = vld [vmem:[%s6171_s2 + $0x10] sm:$0xff] }
   0x6   :  { %4634 = vmatprep.subr.bf16.mxu0 %v4633_v5  ;;  %v820_v19 = vld [vmem:[%s6171_s2 + $0x18] sm:$0xff] }
   0x9   :  { %4636 = vmatpush3.bf16.msra.mxu0 %v4633_v5 }
   0xa   :  { %4638 = vmatprep.subr.bf16.mxu0 %v4637_v9 }
   0xd   :  { %4640 = vmatpush3.bf16.msra.mxu0 %v4637_v9 }
   0xe   :  { %4642 = vmatprep.subr.bf16.mxu0 %v4641_v12 }
  0x11   :  { %4644 = vmatpush3.bf16.msra.mxu0 %v4641_v12 }
  0x14   :  { %4374 = vmatmul.mubr.msk.f32.vlgmr.msra.gmra.mrb[0].mxu0 %vm101_vm0, %v26_v13 }
  0x15   :  { %4376 = vmatprep.mubr.msk.f32.mxu0 %vm101_vm0, %v27_v14 }
  0x18   :  { %4377 = vmatmul.mubr.msk.f32.gmra.mrb[2].mxu0 %vm101_vm0, %v28_v15 }
  0x19   :  { %4379 = vmatprep.mubr.msk.f32.mxu0 %vm101_vm0, %v29_v16 }
  0x1a   :  { %11 = vsyncpa [#allocation4], 0  ;;  %v31_v20 = vld [vmem:[%s6169_s0 + $0x30] sm:$0xff]  ;;  %v4645_v21 = vpack.c.bf16 %v820_v19, %v819_v18  ;;  %v32_v22 = vld [vmem:[%s6169_s0 + $0x38] sm:$0xff]  ;;  %vm743_vm1 = vcmask 130048   ;;  %vm2545_vm2 = vcmask 261120  }
  0x1b   :  { %v33_v23 = vld [vmem:[%s6169_s0 + $0x40] sm:$0xff]  ;;  %v34_v24 = vld [vmem:[%s6169_s0 + $0x48] sm:$0xff]  ;;  %v35_v25 = vld [vmem:[%s6169_s0 + $0x50] sm:$0xff]  ;;  %vm3990_vm3 = vcmask 25600  }
  0x1c   :  { %4380 = vmatmul.mubr.msk.f32.gmra.mrb[4].mxu0 %vm101_vm0, %v30_v17  ;;  %4646 = vmatprep.subr.bf16.mxu0 %v4645_v21  ;;  %v36_v26 = vld [vmem:[%s6169_s0 + $0x58] sm:$0xff]  ;;  %v37_v27 = vld [vmem:[%s6169_s0 + $0x60] sm:$0xff]  ;;  %v38_v28 = vld [vmem:[%s6169_s0 + $0x68] sm:$0xff] }
  0x1d   :  { %4382 = vmatprep.mubr.msk.f32.mxu0 %vm101_vm0, %v31_v20  ;;  %4648 = vmatpush3.bf16.msra.mxu0 %v4645_v21  ;;  %v39_v29 = vld [vmem:[%s6169_s0 + $0x70] sm:$0xff]  ;;  %v40_v30 = vld [vmem:[%s6169_s0 + $0x78] sm:$0xff]  ;;  %v41_v31 = vld [vmem:[%s6169_s0 + $0x80] sm:$0xff] }
  0x1e   :  { %v42_v32 = vld [vmem:[%s6169_s0 + $0x88] sm:$0xff]  ;;  %v43_v33 = vld [vmem:[%s6169_s0 + $0x90] sm:$0xff]  ;;  %v44_v34 = vld [vmem:[%s6169_s0 + $0x98] sm:$0xff] }
  0x1f   :  { %v45_v35 = vld [vmem:[%s6169_s0 + $0xa0] sm:$0xff]  ;;  %v46_v36 = vld [vmem:[%s6169_s0 + $0xa8] sm:$0xff]  ;;  %v47_v37 = vld [vmem:[%s6169_s0 + $0xb0] sm:$0xff] }
  0x20   :  { %4383 = vmatmul.mubr.msk.f32.gmra.mrb[6].mxu0 %vm101_vm0, %v32_v22  ;;  %v48_v38 = vld [vmem:[%s6169_s0 + $0xb8] sm:$0xff]  ;;  %v49_v39 = vld [vmem:[%s6169_s0 + $0xc0] sm:$0xff]  ;;  %v50_v40 = vld [vmem:[%s6169_s0 + $0xc8] sm:$0xff] }
  0x21   :  { %4385 = vmatprep.mubr.msk.f32.mxu0 %vm101_vm0, %v33_v23  ;;  %v51_v41 = vld [vmem:[%s6169_s0 + $0xd0] sm:$0xff]  ;;  %v52_v42 = vld [vmem:[%s6169_s0 + $0xd8] sm:$0xff]  ;;  %v53_v43 = vld [vmem:[%s6169_s0 + $0xe0] sm:$0xff] }
  0x22   :  { %v54_v44 = vld [vmem:[%s6169_s0 + $0xe8] sm:$0xff]  ;;  %v55_v45 = vld [vmem:[%s6169_s0 + $0xf0] sm:$0xff]  ;;  %v56_v46 = vld [vmem:[%s6169_s0 + $0xf8] sm:$0xff] }
  0x23   :  { %v57_v47 = vld [vmem:[%s6169_s0 + $0x100] sm:$0xff]  ;;  %v58_v48 = vld [vmem:[%s6169_s0 + $0x108] sm:$0xff]  ;;  %v59_v49 = vld [vmem:[%s6169_s0 + $0x110] sm:$0xff] }
  0x24   :  { %4386 = vmatmul.mubr.msk.f32.gmra.mrb[8].mxu0 %vm101_vm0, %v34_v24  ;;  %v60_v50 = vld [vmem:[%s6169_s0 + $0x118] sm:$0xff]  ;;  %v61_v51 = vld [vmem:[%s6169_s0 + $0x120] sm:$0xff]  ;;  %v62_v52 = vld [vmem:[%s6169_s0 + $0x128] sm:$0xff] }
  0x25   :  { %4388 = vmatprep.mubr.msk.f32.mxu0 %vm101_vm0, %v35_v25  ;;  %v63_v53 = vld [vmem:[%s6169_s0 + $0x130] sm:$0xff]  ;;  %v64_v54 = vld [vmem:[%s6169_s0 + $0x138] sm:$0xff]  ;;  %v65_v55 = vld [vmem:[%s6169_s0 + $0x140] sm:$0xff] }
  0x26   :  { %v66_v56 = vld [vmem:[%s6169_s0 + $0x148] sm:$0xff]  ;;  %v67_v57 = vld [vmem:[%s6169_s0 + $0x150] sm:$0xff]  ;;  %v68_v58 = vld [vmem:[%s6169_s0 + $0x158] sm:$0xff] }
  0x27   :  { %v69_v59 = vld [vmem:[%s6169_s0 + $0x160] sm:$0xff]  ;;  %v70_v60 = vld [vmem:[%s6169_s0 + $0x168] sm:$0xff]  ;;  %v71_v61 = vld [vmem:[%s6169_s0 + $0x170] sm:$0xff] }
  0x28   :  { %4389 = vmatmul.mubr.msk.f32.gmra.mrb[10].mxu0 %vm101_vm0, %v36_v26  ;;  %v72_v62 = vld [vmem:[%s6169_s0 + $0x178] sm:$0xff]  ;;  %v73_v63 = vld [vmem:[%s6169_s0 + $0x180] sm:$0xff]  ;;  %v74_v0 = vld [vmem:[%s6169_s0 + $0x188] sm:$0xff] }
  0x29   :  { %4391 = vmatprep.mubr.msk.f32.mxu0 %vm101_vm0, %v37_v27  ;;  %v75_v1 = vld [vmem:[%s6169_s0 + $0x190] sm:$0xff]  ;;  %v76_v2 = vld [vmem:[%s6169_s0 + $0x198] sm:$0xff]  ;;  %v77_v3 = vld [vmem:[%s6169_s0 + $0x1a0] sm:$0xff] }
  0x2a   :  { %v78_v4 = vld [vmem:[%s6169_s0 + $0x1a8] sm:$0xff]  ;;  %v79_v5 = vld [vmem:[%s6169_s0 + $0x1b0] sm:$0xff]  ;;  %v80_v6 = vld [vmem:[%s6169_s0 + $0x1b8] sm:$0xff] }
  0x2b   :  { %v81_v7 = vld [vmem:[%s6169_s0 + $0x1c0] sm:$0xff]  ;;  %v814_v9 = vld [vmem:[%s6171_s2 + $0x8] sm:$0xff]  ;;  %v83_v12 = vld [vmem:[%s6169_s0 + $0x1d0] sm:$0xff] }
  0x2c   :  { %4392 = vmatmul.mubr.msk.f32.gmra.mrb[12].mxu0 %vm101_vm0, %v38_v28  ;;  %v813_v8 = vld [vmem:[%s6171_s2] sm:$0xff]  ;;  %v82_v11 = vld [vmem:[%s6169_s0 + $0x1c8] sm:$0xff]  ;;  %v84_v13 = vld [vmem:[%s6169_s0 + $0x1d8] sm:$0xff] }
  0x2d   :  { %4394 = vmatprep.mubr.msk.f32.mxu0 %vm101_vm0, %v39_v29  ;;  %v5285_v10 = vpack.c.bf16 %v814_v9, %v813_v8  ;;  %v85_v14 = vld [vmem:[%s6169_s0 + $0x1e0] sm:$0xff]  ;;  %v86_v15 = vld [vmem:[%s6169_s0 + $0x1e8] sm:$0xff]  ;;  %v87_v16 = vld [vmem:[%s6169_s0 + $0x1f0] sm:$0xff] }
  0x2e   :  { %v88_v17 = vld [vmem:[%s6169_s0 + $0x1f8] sm:$0xff]  ;;  %v1340_v18 = vld [vmem:[%s6171_s2 + $0x50] sm:$0xff]  ;;  %v1447_v21 = vld [vmem:[%s6171_s2 + $0x60] sm:$0xff] }
  0x2f   :  { %4650 = vmatprep.subr.bf16.mxu0 %v5285_v10  ;;  %v1341_v19 = vld [vmem:[%s6171_s2 + $0x58] sm:$0xff]  ;;  %v1448_v22 = vld [vmem:[%s6171_s2 + $0x68] sm:$0xff]  ;;  %v5335_v24 = vld [vmem:[%s6174_s5] ss:$0 sm:$0xff] }
  0x30   :  { %4395 = vmatmul.mubr.msk.f32.gmra.mrb[14].mxu0 %vm101_vm0, %v40_v30  ;;  %v4665_v20 = vpack.c.bf16 %v1341_v19, %v1340_v18  ;;  %v5329_v23 = vpack.c.bf16 %v1448_v22, %v1447_v21  ;;  %v1126_v8 = vld [vmem:[%s6171_s2 + $0x30] sm:$0xff]  ;;  %v1127_v9 = vld [vmem:[%s6171_s2 + $0x38] sm:$0xff] }
  0x31   :  { %4397 = vmatprep.mubr.msk.f32.mxu0 %vm101_vm0, %v41_v31 }
  0x32   :  { %4666 = vmatprep.subr.bf16.mxu1 %v4665_v20 }
  0x33   :  { %4668 = vmatpush3.bf16.msra.mxu1 %v4665_v20 }
  0x34   :  { %4398 = vmatmul.mubr.msk.f32.gmra.mrb[16].mxu0 %vm101_vm0, %v42_v32  ;;  %4670 = vmatprep.subr.bf16.mxu1 %v5329_v23 }
  0x35   :  { %4400 = vmatprep.mubr.msk.f32.mxu0 %vm101_vm0, %v43_v33 }
  0x38   :  { %4401 = vmatmul.mubr.msk.f32.gmra.mrb[18].mxu0 %vm101_vm0, %v44_v34 }
  0x39   :  { %4403 = vmatprep.mubr.msk.f32.mxu0 %vm101_vm0, %v45_v35 }
  0x3c   :  { %4404 = vmatmul.mubr.msk.f32.gmra.mrb[20].mxu0 %vm101_vm0, %v46_v36 }
  0x3d   :  { %4406 = vmatprep.mubr.msk.f32.mxu0 %vm101_vm0, %v47_v37 }
  0x40   :  { %4407 = vmatmul.mubr.msk.f32.gmra.mrb[22].mxu0 %vm101_vm0, %v48_v38 }
  0x41   :  { %4409 = vmatprep.mubr.msk.f32.mxu0 %vm101_vm0, %v49_v39 }
  0x44   :  { %4410 = vmatmul.mubr.msk.f32.gmra.mrb[24].mxu0 %vm101_vm0, %v50_v40 }
  0x45   :  { %4412 = vmatprep.mubr.msk.f32.mxu0 %vm101_vm0, %v51_v41 }
  0x48   :  { %4413 = vmatmul.mubr.msk.f32.gmra.mrb[26].mxu0 %vm101_vm0, %v52_v42 }
  0x49   :  { %4415 = vmatprep.mubr.msk.f32.mxu0 %vm101_vm0, %v53_v43 }
  0x4c   :  { %4416 = vmatmul.mubr.msk.f32.gmra.mrb[28].mxu0 %vm101_vm0, %v54_v44 }
  0x4d   :  { %4418 = vmatprep.mubr.msk.f32.mxu0 %vm101_vm0, %v55_v45 }
  0x50   :  { %4419 = vmatmul.mubr.msk.f32.gmra.mrb[30].mxu0 %vm101_vm0, %v56_v46 }
  0x51   :  { %4421 = vmatprep.mubr.msk.f32.mxu0 %vm101_vm0, %v57_v47 }
  0x54   :  { %4422 = vmatmul.mubr.msk.f32.gmra.mrb[32].mxu0 %vm101_vm0, %v58_v48 }
  0x55   :  { %4424 = vmatprep.mubr.msk.f32.mxu0 %vm101_vm0, %v59_v49 }
  0x58   :  { %4425 = vmatmul.mubr.msk.f32.gmra.mrb[34].mxu0 %vm101_vm0, %v60_v50 }
  0x59   :  { %4427 = vmatprep.mubr.msk.f32.mxu0 %vm101_vm0, %v61_v51 }
  0x5c   :  { %4428 = vmatmul.mubr.msk.f32.gmra.mrb[36].mxu0 %vm101_vm0, %v62_v52 }
  0x5d   :  { %4430 = vmatprep.mubr.msk.f32.mxu0 %vm101_vm0, %v63_v53  ;;  %v1019_v53 = vld [vmem:[%s6171_s2 + $0x20] sm:$0xff] }
  0x60   :  { %4431 = vmatmul.mubr.msk.f32.gmra.mrb[38].mxu0 %vm101_vm0, %v64_v54  ;;  %v1020_v54 = vld [vmem:[%s6171_s2 + $0x28] sm:$0xff] }
  0x61   :  { %4433 = vmatprep.mubr.msk.f32.mxu0 %vm101_vm0, %v65_v55 }
  0x64   :  { %4434 = vmatmul.mubr.msk.f32.gmra.mrb[40].mxu0 %vm101_vm0, %v66_v56 }
  0x65   :  { %4436 = vmatprep.mubr.msk.f32.mxu0 %vm101_vm0, %v67_v57 }
  0x68   :  { %4437 = vmatmul.mubr.msk.f32.gmra.mrb[42].mxu0 %vm101_vm0, %v68_v58 }
  0x69   :  { %4439 = vmatprep.mubr.msk.f32.mxu0 %vm101_vm0, %v69_v59 }
  0x6c   :  { %4440 = vmatmul.mubr.msk.f32.gmra.mrb[44].mxu0 %vm101_vm0, %v70_v60 }
  0x6d   :  { %4442 = vmatprep.mubr.msk.f32.mxu0 %vm101_vm0, %v71_v61  ;;  %v4653_v61 = vpack.c.bf16 %v1020_v54, %v1019_v53 }
  0x70   :  { %4443 = vmatmul.mubr.msk.f32.gmra.mrb[46].mxu0 %vm101_vm0, %v72_v62 }
  0x71   :  { %4445 = vmatprep.mubr.msk.f32.mxu0 %vm101_vm0, %v73_v63 }
  0x74   :  { %4446 = vmatmul.mubr.msk.f32.gmra.mrb[48].mxu0 %vm101_vm0, %v74_v0 }
  0x75   :  { %4448 = vmatprep.mubr.msk.f32.mxu0 %vm101_vm0, %v75_v1 }
  0x78   :  { %4449 = vmatmul.mubr.msk.f32.gmra.mrb[50].mxu0 %vm101_vm0, %v76_v2 }
  0x79   :  { %4451 = vmatprep.mubr.msk.f32.mxu0 %vm101_vm0, %v77_v3 }
  0x7c   :  { %4452 = vmatmul.mubr.msk.f32.gmra.mrb[52].mxu0 %vm101_vm0, %v78_v4 }
  0x7d   :  { %4454 = vmatprep.mubr.msk.f32.mxu0 %vm101_vm0, %v79_v5 }
  0x80   :  { %4455 = vmatmul.mubr.msk.f32.gmra.mrb[54].mxu0 %vm101_vm0, %v80_v6 }
  0x81   :  { %4457 = vmatprep.mubr.msk.f32.mxu0 %vm101_vm0, %v81_v7 }
  0x84   :  { %4458 = vmatmul.mubr.msk.f32.gmra.mrb[56].mxu0 %vm101_vm0, %v82_v11 }
  0x85   :  { %4460 = vmatprep.mubr.msk.f32.mxu0 %vm101_vm0, %v83_v12 }
  0x88   :  { %4461 = vmatmul.mubr.msk.f32.gmra.mrb[58].mxu0 %vm101_vm0, %v84_v13 }
  0x89   :  { %4463 = vmatprep.mubr.msk.f32.mxu0 %vm101_vm0, %v85_v14 }
  0x8c   :  { %4464 = vmatmul.mubr.msk.f32.gmra.mrb[60].mxu0 %vm101_vm0, %v86_v15 }
  0x8d   :  { %4466 = vmatprep.mubr.msk.f32.mxu0 %vm101_vm0, %v87_v16  ;;  %v4657_v16 = vpack.c.bf16 %v1127_v9, %v1126_v8 }
  0x90   :  { %4467 = vmatmul.mubr.msk.f32.gmra.mrb[62].mxu0 %vm101_vm0, %v88_v17 }
  0xe7   :  { %v4375_v25 = vpop.f32.mrb[0].mxu0 }
  0xe8   :  { %v366_v26 = vadd.f32 %v4375_v25, %v5335_v24  ;;  %v360_v27 = vpop.f32.mrb[1].mxu0 }
  0xe9   :  { %v361_v28 = vadd.f32 %v5335_v24, %v360_v27 }
  0xea   :  { %v680_v29 = vmax.f32 %v366_v26, 0.0 }
  0xeb   :  { %v679_v30 = vmax.f32 %v361_v28, 0.0  ;;  %v4378_v31 = vpop.f32.mrb[2].mxu0 }
  0xec   :  { %745 = vst.msk [vmem:[#allocation2 + $0x8] sm:$0xff] %vm743_vm1, %v680_v29  ;;  %v376_v32 = vadd.f32 %v4378_v31, %v5335_v24  ;;  %v370_v33 = vpop.f32.mrb[3].mxu0  ;;  %v1233_v29 = vld [vmem:[%s6171_s2 + $0x40] sm:$0xff] }
  0xed   :  { %744 = vst.msk [vmem:[#allocation2] sm:$0xff] %vm743_vm1, %v679_v30  ;;  %v371_v34 = vadd.f32 %v5335_v24, %v370_v33  ;;  %v1234_v30 = vld [vmem:[%s6171_s2 + $0x48] sm:$0xff] }
  0xee   :  { %v682_v35 = vmax.f32 %v376_v32, 0.0 }
  0xef   :  { %v681_v36 = vmax.f32 %v371_v34, 0.0  ;;  %v4381_v37 = vpop.f32.mrb[4].mxu0 }
  0xf0   :  { %747 = vst.msk [vmem:[#allocation2 + $0x18] sm:$0xff] %vm743_vm1, %v682_v35  ;;  %v386_v38 = vadd.f32 %v4381_v37, %v5335_v24  ;;  %v380_v39 = vpop.f32.mrb[5].mxu0  ;;  %v4661_v37 = vpack.c.bf16 %v1234_v30, %v1233_v29 }
  0xf1   :  { %746 = vst.msk [vmem:[#allocation2 + $0x10] sm:$0xff] %vm743_vm1, %v681_v36  ;;  %v381_v40 = vadd.f32 %v5335_v24, %v380_v39 }
  0xf2   :  { %v684_v41 = vmax.f32 %v386_v38, 0.0 }
  0xf3   :  { %v683_v42 = vmax.f32 %v381_v40, 0.0  ;;  %v4384_v43 = vpop.f32.mrb[6].mxu0  ;;  %v810_v18 = vld [vmem:[#allocation2 + $0x8] sm:$0xff] }
  0xf4   :  { %749 = vst.msk [vmem:[#allocation2 + $0x28] sm:$0xff] %vm743_vm1, %v684_v41  ;;  %v396_v44 = vadd.f32 %v4384_v43, %v5335_v24  ;;  %v390_v45 = vpop.f32.mrb[7].mxu0  ;;  %v809_v11 = vld [vmem:[#allocation2] sm:$0xff] }
  0xf5   :  { %748 = vst.msk [vmem:[#allocation2 + $0x20] sm:$0xff] %vm743_vm1, %v683_v42  ;;  %v391_v46 = vadd.f32 %v5335_v24, %v390_v45 }
  0xf6   :  { %v686_v47 = vmax.f32 %v396_v44, 0.0 }
  0xf7   :  { %v685_v48 = vmax.f32 %v391_v46, 0.0  ;;  %v4387_v49 = vpop.f32.mrb[8].mxu0  ;;  %v812_v28 = vld [vmem:[#allocation2 + $0x18] sm:$0xff] }
  0xf8   :  { %751 = vst.msk [vmem:[#allocation2 + $0x38] sm:$0xff] %vm743_vm1, %v686_v47  ;;  %v406_v50 = vadd.f32 %v4387_v49, %v5335_v24  ;;  %v400_v51 = vpop.f32.mrb[9].mxu0  ;;  %v811_v20 = vld [vmem:[#allocation2 + $0x10] sm:$0xff] }
  0xf9   :  { %750 = vst.msk [vmem:[#allocation2 + $0x30] sm:$0xff] %vm743_vm1, %v685_v48  ;;  %v401_v52 = vadd.f32 %v5335_v24, %v400_v51 }
  0xfa   :  { %v688_v55 = vmax.f32 %v406_v50, 0.0 }
  0xfb   :  { %v687_v56 = vmax.f32 %v401_v52, 0.0  ;;  %v4390_v57 = vpop.f32.mrb[10].mxu0  ;;  %v816_v63 = vld [vmem:[#allocation2 + $0x28] sm:$0xff] }
  0xfc   :  { %753 = vst.msk [vmem:[#allocation2 + $0x48] sm:$0xff] %vm743_vm1, %v688_v55  ;;  %v416_v58 = vadd.f32 %v4390_v57, %v5335_v24  ;;  %v410_v59 = vpop.f32.mrb[11].mxu0  ;;  %v815_v60 = vld [vmem:[#allocation2 + $0x20] sm:$0xff] }
  0xfd   :  { %752 = vst.msk [vmem:[#allocation2 + $0x40] sm:$0xff] %vm743_vm1, %v687_v56  ;;  %v411_v62 = vadd.f32 %v5335_v24, %v410_v59  ;;  %4473 = vmatprep.mubr.msk.f32.mxu0 %vm743_vm1, %v815_v60 }
  0xfe   :  { %v690_v0 = vmax.f32 %v416_v58, 0.0  ;;  %4474 = vmatmul.mubr.msk.f32.vlgmr.msra.gmra.mrb[64].mxu0 %vm743_vm1, %v816_v63 }
  0xff   :  { %v689_v1 = vmax.f32 %v411_v62, 0.0  ;;  %v4393_v2 = vpop.f32.mrb[12].mxu0  ;;  %4652 = vmatpush3.bf16.msra.mxu0 %v5285_v10  ;;  %v818_v7 = vld [vmem:[#allocation2 + $0x38] sm:$0xff] }
 0x100   :  { %755 = vst.msk [vmem:[#allocation2 + $0x58] sm:$0xff] %vm743_vm1, %v690_v0  ;;  %v426_v3 = vadd.f32 %v4393_v2, %v5335_v24  ;;  %v420_v4 = vpop.f32.mrb[13].mxu0  ;;  %v817_v5 = vld [vmem:[#allocation2 + $0x30] sm:$0xff]  ;;  %4654 = vmatprep.subr.bf16.mxu0 %v4653_v61 }
 0x101   :  { %754 = vst.msk [vmem:[#allocation2 + $0x50] sm:$0xff] %vm743_vm1, %v689_v1  ;;  %v421_v6 = vadd.f32 %v5335_v24, %v420_v4  ;;  %4476 = vmatprep.mubr.msk.f32.mxu0 %vm743_vm1, %v817_v5  ;;  %v1554_v0 = vld [vmem:[%s6171_s2 + $0x70] sm:$0xff]  ;;  %v1555_v1 = vld [vmem:[%s6171_s2 + $0x78] sm:$0xff] }
 0x102   :  { %v692_v10 = vmax.f32 %v426_v3, 0.0  ;;  %4477 = vmatmul.mubr.msk.f32.gmra.mrb[66].mxu0 %vm743_vm1, %v818_v7  ;;  %v4673_v9 = vpack.c.bf16 %v1555_v1, %v1554_v0 }
 0x103   :  { %v691_v12 = vmax.f32 %v421_v6, 0.0  ;;  %v4396_v13 = vpop.f32.mrb[14].mxu0  ;;  %4483 = vmatprep.mubr.msk.f32.mxu0 %vm743_vm1, %v809_v11  ;;  %v1016_v39 = vld [vmem:[#allocation2 + $0x48] sm:$0xff] }
 0x104   :  { %757 = vst.msk [vmem:[#allocation2 + $0x68] sm:$0xff] %vm743_vm1, %v692_v10  ;;  %v436_v14 = vadd.f32 %v4396_v13, %v5335_v24  ;;  %v430_v15 = vpop.f32.mrb[15].mxu0  ;;  %v1015_v32 = vld [vmem:[#allocation2 + $0x40] sm:$0xff] }
 0x105   :  { %756 = vst.msk [vmem:[#allocation2 + $0x60] sm:$0xff] %vm743_vm1, %v691_v12  ;;  %v431_v17 = vadd.f32 %v5335_v24, %v430_v15 }
 0x106   :  { %v694_v19 = vmax.f32 %v436_v14, 0.0  ;;  %4484 = vmatmul.mubr.msk.f32.vlgmr.msra.gmra.mrb[64].mxu0 %vm743_vm1, %v810_v18 }
 0x107   :  { %v693_v21 = vmax.f32 %v431_v17, 0.0  ;;  %v4399_v22 = vpop.f32.mrb[16].mxu0  ;;  %4486 = vmatprep.mubr.msk.f32.mxu0 %vm743_vm1, %v811_v20  ;;  %4656 = vmatpush3.bf16.msra.mxu0 %v4653_v61  ;;  %v1018_v47 = vld [vmem:[#allocation2 + $0x58] sm:$0xff]  ;;  %v1661_v20 = vld [vmem:[%s6171_s2 + $0x80] sm:$0xff] }
 0x108   :  { %759 = vst.msk [vmem:[#allocation2 + $0x78] sm:$0xff] %vm743_vm1, %v694_v19  ;;  %v446_v25 = vadd.f32 %v4399_v22, %v5335_v24  ;;  %v440_v26 = vpop.f32.mrb[17].mxu0  ;;  %4658 = vmatprep.subr.bf16.mxu0 %v4657_v16  ;;  %v1017_v41 = vld [vmem:[#allocation2 + $0x50] sm:$0xff] }
 0x109   :  { %758 = vst.msk [vmem:[#allocation2 + $0x70] sm:$0xff] %vm743_vm1, %v693_v21  ;;  %v441_v27 = vadd.f32 %v5335_v24, %v440_v26 }
 0x10a   :  { %v696_v31 = vmax.f32 %v446_v25, 0.0  ;;  %4487 = vmatmul.mubr.msk.f32.gmra.mrb[66].mxu0 %vm743_vm1, %v812_v28  ;;  %v1662_v25 = vld [vmem:[%s6171_s2 + $0x88] sm:$0xff] }
 0x10b   :  { %v695_v33 = vmax.f32 %v441_v27, 0.0  ;;  %v4402_v34 = vpop.f32.mrb[18].mxu0  ;;  %4493 = vmatprep.mubr.msk.f32.mxu0 %vm743_vm1, %v1015_v32  ;;  %v1123_v55 = vld [vmem:[#allocation2 + $0x68] sm:$0xff]  ;;  %v4677_v32 = vpack.c.bf16 %v1662_v25, %v1661_v20 }
 0x10c   :  { %761 = vst.msk [vmem:[#allocation2 + $0x88] sm:$0xff] %vm743_vm1, %v696_v31  ;;  %v456_v35 = vadd.f32 %v4402_v34, %v5335_v24  ;;  %v450_v36 = vpop.f32.mrb[19].mxu0  ;;  %v1122_v49 = vld [vmem:[#allocation2 + $0x60] sm:$0xff] }
 0x10d   :  { %760 = vst.msk [vmem:[#allocation2 + $0x80] sm:$0xff] %vm743_vm1, %v695_v33  ;;  %v451_v38 = vadd.f32 %v5335_v24, %v450_v36 }
 0x10e   :  { %v698_v40 = vmax.f32 %v456_v35, 0.0  ;;  %4494 = vmatmul.mubr.msk.f32.vlgmr.msra.gmra.mrb[64].mxu0 %vm743_vm1, %v1016_v39 }
 0x10f   :  { %v697_v42 = vmax.f32 %v451_v38, 0.0  ;;  %v4405_v43 = vpop.f32.mrb[20].mxu0  ;;  %4496 = vmatprep.mubr.msk.f32.mxu0 %vm743_vm1, %v1017_v41  ;;  %4660 = vmatpush3.bf16.msra.mxu0 %v4657_v16  ;;  %v1125_v63 = vld [vmem:[#allocation2 + $0x78] sm:$0xff] }
 0x110   :  { %763 = vst.msk [vmem:[#allocation2 + $0x98] sm:$0xff] %vm743_vm1, %v698_v40  ;;  %v466_v44 = vadd.f32 %v4405_v43, %v5335_v24  ;;  %v460_v45 = vpop.f32.mrb[21].mxu0  ;;  %4662 = vmatprep.subr.bf16.mxu0 %v4661_v37  ;;  %v1124_v57 = vld [vmem:[#allocation2 + $0x70] sm:$0xff] }
 0x111   :  { %762 = vst.msk [vmem:[#allocation2 + $0x90] sm:$0xff] %vm743_vm1, %v697_v42  ;;  %v461_v46 = vadd.f32 %v5335_v24, %v460_v45  ;;  %v1768_v43 = vld [vmem:[%s6171_s2 + $0x90] sm:$0xff] }
 0x112   :  { %v700_v48 = vmax.f32 %v466_v44, 0.0  ;;  %4497 = vmatmul.mubr.msk.f32.gmra.mrb[66].mxu0 %vm743_vm1, %v1018_v47  ;;  %v1769_v44 = vld [vmem:[%s6171_s2 + $0x98] sm:$0xff] }
 0x113   :  { %v699_v50 = vmax.f32 %v461_v46, 0.0  ;;  %v4408_v51 = vpop.f32.mrb[22].mxu0  ;;  %4503 = vmatprep.mubr.msk.f32.mxu0 %vm743_vm1, %v1122_v49  ;;  %v1230_v11 = vld [vmem:[#allocation2 + $0x88] sm:$0xff] }
 0x114   :  { %765 = vst.msk [vmem:[#allocation2 + $0xa8] sm:$0xff] %vm743_vm1, %v700_v48  ;;  %v476_v52 = vadd.f32 %v4408_v51, %v5335_v24  ;;  %v470_v53 = vpop.f32.mrb[23].mxu0  ;;  %v1229_v3 = vld [vmem:[#allocation2 + $0x80] sm:$0xff]  ;;  %v4681_v51 = vpack.c.bf16 %v1769_v44, %v1768_v43 }
 0x115   :  { %764 = vst.msk [vmem:[#allocation2 + $0xa0] sm:$0xff] %vm743_vm1, %v699_v50  ;;  %v471_v54 = vadd.f32 %v5335_v24, %v470_v53 }
 0x116   :  { %v702_v56 = vmax.f32 %v476_v52, 0.0  ;;  %4504 = vmatmul.mubr.msk.f32.vlgmr.msra.gmra.mrb[64].mxu0 %vm743_vm1, %v1123_v55 }
 0x117   :  { %v701_v58 = vmax.f32 %v471_v54, 0.0  ;;  %v4411_v59 = vpop.f32.mrb[24].mxu0  ;;  %4506 = vmatprep.mubr.msk.f32.mxu0 %vm743_vm1, %v1124_v57  ;;  %4664 = vmatpush3.bf16.msra.mxu0 %v4661_v37 }
 0x118   :  { %767 = vst.msk [vmem:[#allocation2 + $0xb8] sm:$0xff] %vm743_vm1, %v702_v56  ;;  %v486_v60 = vadd.f32 %v4411_v59, %v5335_v24  ;;  %v480_v61 = vpop.f32.mrb[25].mxu0  ;;  %v1231_v14 = vld [vmem:[#allocation2 + $0x90] sm:$0xff] }
 0x119   :  { %766 = vst.msk [vmem:[#allocation2 + $0xb0] sm:$0xff] %vm743_vm1, %v701_v58  ;;  %v481_v62 = vadd.f32 %v5335_v24, %v480_v61 }
 0x11a   :  { %v704_v2 = vmax.f32 %v486_v60, 0.0  ;;  %4507 = vmatmul.mubr.msk.f32.gmra.mrb[66].mxu0 %vm743_vm1, %v1125_v63  ;;  %v1876_v63 = vld [vmem:[%s6171_s2 + $0xa8] sm:$0xff] }
 0x11b   :  { %v703_v4 = vmax.f32 %v481_v62, 0.0  ;;  %v4414_v5 = vpop.f32.mrb[26].mxu0  ;;  %4513 = vmatprep.mubr.msk.f32.mxu0 %vm743_vm1, %v1229_v3  ;;  %v1337_v12 = vld [vmem:[#allocation2 + $0xa8] sm:$0xff]  ;;  %v1875_v62 = vld [vmem:[%s6171_s2 + $0xa0] sm:$0xff] }
 0x11c   :  { %769 = vst.msk [vmem:[#allocation2 + $0xc8] sm:$0xff] %vm743_vm1, %v704_v2  ;;  %v496_v6 = vadd.f32 %v4414_v5, %v5335_v24  ;;  %v490_v7 = vpop.f32.mrb[27].mxu0  ;;  %v1336_v8 = vld [vmem:[#allocation2 + $0xa0] sm:$0xff] }
 0x11d   :  { %768 = vst.msk [vmem:[#allocation2 + $0xc0] sm:$0xff] %vm743_vm1, %v703_v4  ;;  %v491_v10 = vadd.f32 %v5335_v24, %v490_v7  ;;  %4523 = vmatprep.mubr.msk.f32.mxu1 %vm743_vm1, %v1336_v8 }
 0x11e   :  { %v706_v13 = vmax.f32 %v496_v6, 0.0  ;;  %4514 = vmatmul.mubr.msk.f32.vlgmr.msra.gmra.mrb[64].mxu0 %vm743_vm1, %v1230_v11  ;;  %4524 = vmatmul.mubr.msk.f32.vlgmr.msra.gmra.mrb[0].mxu1 %vm743_vm1, %v1337_v12  ;;  %v4685_v6 = vpack.c.bf16 %v1876_v63, %v1875_v62 }
 0x11f   :  { %v705_v15 = vmax.f32 %v491_v10, 0.0  ;;  %4672 = vmatpush3.bf16.msra.mxu1 %v5329_v23  ;;  %v4417_v16 = vpop.f32.mrb[28].mxu0  ;;  %4516 = vmatprep.mubr.msk.f32.mxu0 %vm743_vm1, %v1231_v14  ;;  %v1232_v23 = vld [vmem:[#allocation2 + $0x98] sm:$0xff] }
 0x120   :  { %771 = vst.msk [vmem:[#allocation2 + $0xd8] sm:$0xff] %vm743_vm1, %v706_v13  ;;  %v506_v17 = vadd.f32 %v4417_v16, %v5335_v24  ;;  %v500_v18 = vpop.f32.mrb[29].mxu0  ;;  %v1338_v19 = vld [vmem:[#allocation2 + $0xb0] sm:$0xff]  ;;  %4674 = vmatprep.subr.bf16.mxu1 %v4673_v9  ;;  %v1339_v22 = vld [vmem:[#allocation2 + $0xb8] sm:$0xff] }
 0x121   :  { %770 = vst.msk [vmem:[#allocation2 + $0xd0] sm:$0xff] %vm743_vm1, %v705_v15  ;;  %v501_v21 = vadd.f32 %v5335_v24, %v500_v18  ;;  %4526 = vmatprep.mubr.msk.f32.mxu1 %vm743_vm1, %v1338_v19  ;;  %v1983_v18 = vld [vmem:[%s6171_s2 + $0xb8] sm:$0xff] }
 0x122   :  { %v708_v26 = vmax.f32 %v506_v17, 0.0  ;;  %4517 = vmatmul.mubr.msk.f32.gmra.mrb[66].mxu0 %vm743_vm1, %v1232_v23  ;;  %4527 = vmatmul.mubr.msk.f32.gmra.mrb[2].mxu1 %vm743_vm1, %v1339_v22  ;;  %v1982_v17 = vld [vmem:[%s6171_s2 + $0xb0] sm:$0xff] }
 0x123   :  { %v707_v27 = vmax.f32 %v501_v21, 0.0  ;;  %v4420_v28 = vpop.f32.mrb[30].mxu0  ;;  %v1444_v34 = vld [vmem:[#allocation2 + $0xc8] sm:$0xff] }
 0x124   :  { %773 = vst.msk [vmem:[#allocation2 + $0xe8] sm:$0xff] %vm743_vm1, %v708_v26  ;;  %v516_v29 = vadd.f32 %v4420_v28, %v5335_v24  ;;  %v510_v30 = vpop.f32.mrb[31].mxu0  ;;  %v1443_v31 = vld [vmem:[#allocation2 + $0xc0] sm:$0xff]  ;;  %v4689_v26 = vpack.c.bf16 %v1983_v18, %v1982_v17 }
 0x125   :  { %772 = vst.msk [vmem:[#allocation2 + $0xe0] sm:$0xff] %vm743_vm1, %v707_v27  ;;  %v511_v33 = vadd.f32 %v5335_v24, %v510_v30  ;;  %4533 = vmatprep.mubr.msk.f32.mxu1 %vm743_vm1, %v1443_v31 }
 0x126   :  { %v710_v35 = vmax.f32 %v516_v29, 0.0  ;;  %4534 = vmatmul.mubr.msk.f32.vlgmr.msra.gmra.mrb[0].mxu1 %vm743_vm1, %v1444_v34 }
 0x127   :  { %v709_v36 = vmax.f32 %v511_v33, 0.0  ;;  %4676 = vmatpush3.bf16.msra.mxu1 %v4673_v9  ;;  %v4423_v37 = vpop.f32.mrb[32].mxu0  ;;  %v1446_v42 = vld [vmem:[#allocation2 + $0xd8] sm:$0xff] }
 0x128   :  { %775 = vst.msk [vmem:[#allocation2 + $0xf8] sm:$0xff] %vm743_vm1, %v710_v35  ;;  %v526_v38 = vadd.f32 %v4423_v37, %v5335_v24  ;;  %v520_v39 = vpop.f32.mrb[33].mxu0  ;;  %v1445_v40 = vld [vmem:[#allocation2 + $0xd0] sm:$0xff]  ;;  %4678 = vmatprep.subr.bf16.mxu1 %v4677_v32  ;;  %v2089_v37 = vld [vmem:[%s6171_s2 + $0xc0] sm:$0xff] }
 0x129   :  { %774 = vst.msk [vmem:[#allocation2 + $0xf0] sm:$0xff] %vm743_vm1, %v709_v36  ;;  %v521_v41 = vadd.f32 %v5335_v24, %v520_v39  ;;  %4536 = vmatprep.mubr.msk.f32.mxu1 %vm743_vm1, %v1445_v40 }
 0x12a   :  { %v712_v45 = vmax.f32 %v526_v38, 0.0  ;;  %4537 = vmatmul.mubr.msk.f32.gmra.mrb[2].mxu1 %vm743_vm1, %v1446_v42  ;;  %v2090_v38 = vld [vmem:[%s6171_s2 + $0xc8] sm:$0xff] }
 0x12b   :  { %v711_v46 = vmax.f32 %v521_v41, 0.0  ;;  %v4426_v47 = vpop.f32.mrb[34].mxu0  ;;  %v1551_v53 = vld [vmem:[#allocation2 + $0xe8] sm:$0xff] }
 0x12c   :  { %777 = vst.msk [vmem:[#allocation2 + $0x108] sm:$0xff] %vm743_vm1, %v712_v45  ;;  %v536_v48 = vadd.f32 %v4426_v47, %v5335_v24  ;;  %v530_v49 = vpop.f32.mrb[35].mxu0  ;;  %v1550_v50 = vld [vmem:[#allocation2 + $0xe0] sm:$0xff]  ;;  %v4693_v45 = vpack.c.bf16 %v2090_v38, %v2089_v37 }
 0x12d   :  { %776 = vst.msk [vmem:[#allocation2 + $0x100] sm:$0xff] %vm743_vm1, %v711_v46  ;;  %v531_v52 = vadd.f32 %v5335_v24, %v530_v49  ;;  %4543 = vmatprep.mubr.msk.f32.mxu1 %vm743_vm1, %v1550_v50 }
 0x12e   :  { %v714_v54 = vmax.f32 %v536_v48, 0.0  ;;  %4544 = vmatmul.mubr.msk.f32.vlgmr.msra.gmra.mrb[0].mxu1 %vm743_vm1, %v1551_v53 }
 0x12f   :  { %v713_v55 = vmax.f32 %v531_v52, 0.0  ;;  %4680 = vmatpush3.bf16.msra.mxu1 %v4677_v32  ;;  %v4429_v56 = vpop.f32.mrb[36].mxu0  ;;  %v1553_v61 = vld [vmem:[#allocation2 + $0xf8] sm:$0xff] }
 0x130   :  { %779 = vst.msk [vmem:[#allocation2 + $0x118] sm:$0xff] %vm743_vm1, %v714_v54  ;;  %v546_v57 = vadd.f32 %v4429_v56, %v5335_v24  ;;  %v540_v58 = vpop.f32.mrb[37].mxu0  ;;  %v1552_v59 = vld [vmem:[#allocation2 + $0xf0] sm:$0xff]  ;;  %4682 = vmatprep.subr.bf16.mxu1 %v4681_v51 }
 0x131   :  { %778 = vst.msk [vmem:[#allocation2 + $0x110] sm:$0xff] %vm743_vm1, %v713_v55  ;;  %v541_v60 = vadd.f32 %v5335_v24, %v540_v58  ;;  %4546 = vmatprep.mubr.msk.f32.mxu1 %vm743_vm1, %v1552_v59  ;;  %v2196_v56 = vld [vmem:[%s6171_s2 + $0xd0] sm:$0xff] }
 0x132   :  { %v716_v0 = vmax.f32 %v546_v57, 0.0  ;;  %4547 = vmatmul.mubr.msk.f32.gmra.mrb[2].mxu1 %vm743_vm1, %v1553_v61  ;;  %v2197_v57 = vld [vmem:[%s6171_s2 + $0xd8] sm:$0xff] }
 0x133   :  { %v715_v1 = vmax.f32 %v541_v60, 0.0  ;;  %v4432_v2 = vpop.f32.mrb[38].mxu0  ;;  %v1658_v8 = vld [vmem:[#allocation2 + $0x108] sm:$0xff] }
 0x134   :  { %781 = vst.msk [vmem:[#allocation2 + $0x128] sm:$0xff] %vm743_vm1, %v716_v0  ;;  %v556_v3 = vadd.f32 %v4432_v2, %v5335_v24  ;;  %v550_v4 = vpop.f32.mrb[39].mxu0  ;;  %v1657_v5 = vld [vmem:[#allocation2 + $0x100] sm:$0xff]  ;;  %v4697_v0 = vpack.c.bf16 %v2197_v57, %v2196_v56 }
 0x135   :  { %780 = vst.msk [vmem:[#allocation2 + $0x120] sm:$0xff] %vm743_vm1, %v715_v1  ;;  %v551_v7 = vadd.f32 %v5335_v24, %v550_v4  ;;  %4553 = vmatprep.mubr.msk.f32.mxu1 %vm743_vm1, %v1657_v5 }
 0x136   :  { %v718_v9 = vmax.f32 %v556_v3, 0.0  ;;  %4554 = vmatmul.mubr.msk.f32.vlgmr.msra.gmra.mrb[0].mxu1 %vm743_vm1, %v1658_v8 }
 0x137   :  { %v717_v10 = vmax.f32 %v551_v7, 0.0  ;;  %4684 = vmatpush3.bf16.msra.mxu1 %v4681_v51  ;;  %v4435_v11 = vpop.f32.mrb[40].mxu0  ;;  %v1660_v16 = vld [vmem:[#allocation2 + $0x118] sm:$0xff] }
 0x138   :  { %783 = vst.msk [vmem:[#allocation2 + $0x138] sm:$0xff] %vm743_vm1, %v718_v9  ;;  %v566_v12 = vadd.f32 %v4435_v11, %v5335_v24  ;;  %v560_v13 = vpop.f32.mrb[41].mxu0  ;;  %v1659_v14 = vld [vmem:[#allocation2 + $0x110] sm:$0xff]  ;;  %4686 = vmatprep.subr.bf16.mxu1 %v4685_v6  ;;  %v2303_v11 = vld [vmem:[%s6171_s2 + $0xe0] sm:$0xff] }
 0x139   :  { %782 = vst.msk [vmem:[#allocation2 + $0x130] sm:$0xff] %vm743_vm1, %v717_v10  ;;  %v561_v15 = vadd.f32 %v5335_v24, %v560_v13  ;;  %4556 = vmatprep.mubr.msk.f32.mxu1 %vm743_vm1, %v1659_v14 }
 0x13a   :  { %v720_v19 = vmax.f32 %v566_v12, 0.0  ;;  %4557 = vmatmul.mubr.msk.f32.gmra.mrb[2].mxu1 %vm743_vm1, %v1660_v16  ;;  %v2304_v12 = vld [vmem:[%s6171_s2 + $0xe8] sm:$0xff] }
 0x13b   :  { %v719_v20 = vmax.f32 %v561_v15, 0.0  ;;  %v4438_v21 = vpop.f32.mrb[42].mxu0  ;;  %v1765_v28 = vld [vmem:[#allocation2 + $0x128] sm:$0xff] }
 0x13c   :  { %785 = vst.msk [vmem:[#allocation2 + $0x148] sm:$0xff] %vm743_vm1, %v720_v19  ;;  %v576_v23 = vadd.f32 %v4438_v21, %v5335_v24  ;;  %v570_v22 = vpop.f32.mrb[43].mxu0  ;;  %v1764_v25 = vld [vmem:[#allocation2 + $0x120] sm:$0xff]  ;;  %v4701_v19 = vpack.c.bf16 %v2304_v12, %v2303_v11  ;;  %v2541_v11 = vld [vmem:[%s6172_s3 + $0x70] sm:$0xff] }
 0x13d   :  { %784 = vst.msk [vmem:[#allocation2 + $0x140] sm:$0xff] %vm743_vm1, %v719_v20  ;;  %v571_v27 = vadd.f32 %v5335_v24, %v570_v22  ;;  %4563 = vmatprep.mubr.msk.f32.mxu1 %vm743_vm1, %v1764_v25 }
 0x13e   :  { %v722_v29 = vmax.f32 %v576_v23, 0.0  ;;  %4564 = vmatmul.mubr.msk.f32.vlgmr.msra.gmra.mrb[0].mxu1 %vm743_vm1, %v1765_v28 }
 0x13f   :  { %v721_v30 = vmax.f32 %v571_v27, 0.0  ;;  %4688 = vmatpush3.bf16.msra.mxu1 %v4685_v6  ;;  %v4441_v31 = vpop.f32.mrb[44].mxu0  ;;  %v1767_v36 = vld [vmem:[#allocation2 + $0x138] sm:$0xff] }
 0x140   :  { %787 = vst.msk [vmem:[#allocation2 + $0x158] sm:$0xff] %vm743_vm1, %v722_v29  ;;  %v586_v32 = vadd.f32 %v4441_v31, %v5335_v24  ;;  %v580_v33 = vpop.f32.mrb[45].mxu0  ;;  %v1766_v34 = vld [vmem:[#allocation2 + $0x130] sm:$0xff]  ;;  %4690 = vmatprep.subr.bf16.mxu1 %v4689_v26 }
 0x141   :  { %786 = vst.msk [vmem:[#allocation2 + $0x150] sm:$0xff] %vm743_vm1, %v721_v30  ;;  %v581_v35 = vadd.f32 %v5335_v24, %v580_v33  ;;  %4566 = vmatprep.mubr.msk.f32.mxu1 %vm743_vm1, %v1766_v34  ;;  %v2410_v31 = vld [vmem:[%s6171_s2 + $0xf0] sm:$0xff] }
 0x142   :  { %v724_v39 = vmax.f32 %v586_v32, 0.0  ;;  %4567 = vmatmul.mubr.msk.f32.gmra.mrb[2].mxu1 %vm743_vm1, %v1767_v36  ;;  %v2411_v32 = vld [vmem:[%s6171_s2 + $0xf8] sm:$0xff]  ;;  %s4986_s2 = smov [#allocation3]  }
 0x143   :  { %v723_v40 = vmax.f32 %v581_v35, 0.0  ;;  %v4444_v41 = vpop.f32.mrb[46].mxu0  ;;  %v1872_v47 = vld [vmem:[#allocation2 + $0x148] sm:$0xff]  ;;  %s3998_s29 = sshll.u32 %s4986_s2, 4  ;;  %s3999_s29 = int_to_ptr.vmem [resolvable:$true] %s3998_s29 }
 0x144   :  { %789 = vst.msk [vmem:[#allocation2 + $0x168] sm:$0xff] %vm743_vm1, %v724_v39  ;;  %v596_v42 = vadd.f32 %v4444_v41, %v5335_v24  ;;  %v590_v43 = vpop.f32.mrb[47].mxu0  ;;  %v1871_v44 = vld [vmem:[#allocation2 + $0x140] sm:$0xff]  ;;  %v4705_v39 = vpack.c.bf16 %v2411_v32, %v2410_v31  ;;  %s4961_s30 = scalar_lea.vmem %s3999_s29, 32  ;;  %p4966_p1 = scmp.lt.s32.totalorder %s3999_s29, %s3999_s29 }
 0x145   :  { %788 = vst.msk [vmem:[#allocation2 + $0x160] sm:$0xff] %vm743_vm1, %v723_v40  ;;  %v591_v46 = vadd.f32 %v5335_v24, %v590_v43  ;;  %4573 = vmatprep.mubr.msk.f32.mxu1 %vm743_vm1, %v1871_v44  ;;  %v3884_v31 = vld [vmem:[%s6173_s4] sm:$0xff]  ;;  %p4962_p0 = scmp.ne.s32.totalorder %s3999_s29, %s4961_s30  ;;  %p4967_p2 = scmp.lt.s32.totalorder %s4961_s30, %s4961_s30 }
 0x146   :  { %v726_v48 = vmax.f32 %v596_v42, 0.0  ;;  %4574 = vmatmul.mubr.msk.f32.vlgmr.msra.gmra.mrb[0].mxu1 %vm743_vm1, %v1872_v47 }
 0x147   :  { %v725_v49 = vmax.f32 %v591_v46, 0.0  ;;  %4692 = vmatpush3.bf16.msra.mxu1 %v4689_v26  ;;  %v4447_v50 = vpop.f32.mrb[48].mxu0  ;;  %v1874_v55 = vld [vmem:[#allocation2 + $0x158] sm:$0xff]  ;;  %p4968_p3 = por %p4967_p2, %p4966_p1 }
 0x148   :  { %791 = vst.msk [vmem:[#allocation2 + $0x178] sm:$0xff] %vm743_vm1, %v726_v48  ;;  %v606_v51 = vadd.f32 %v4447_v50, %v5335_v24  ;;  %v600_v52 = vpop.f32.mrb[49].mxu0  ;;  %v1873_v53 = vld [vmem:[#allocation2 + $0x150] sm:$0xff]  ;;  %4694 = vmatprep.subr.bf16.mxu1 %v4693_v45 }
 0x149   :  { %790 = vst.msk [vmem:[#allocation2 + $0x170] sm:$0xff] %vm743_vm1, %v725_v49  ;;  %v601_v54 = vadd.f32 %v5335_v24, %v600_v52  ;;  %4576 = vmatprep.mubr.msk.f32.mxu1 %vm743_vm1, %v1873_v53  ;;  %p4969_p4 = pnand %p4968_p3, %p4962_p0 }
 0x14a   :  { %v728_v58 = vmax.f32 %v606_v51, 0.0  ;;  %4577 = vmatmul.mubr.msk.f32.gmra.mrb[2].mxu1 %vm743_vm1, %v1874_v55 }
 0x14b   :  { %v727_v59 = vmax.f32 %v601_v54, 0.0  ;;  %v4450_v60 = vpop.f32.mrb[50].mxu0  ;;  %v1979_v2 = vld [vmem:[#allocation2 + $0x168] sm:$0xff] }
 0x14c   :  { %793 = vst.msk [vmem:[#allocation2 + $0x188] sm:$0xff] %vm743_vm1, %v728_v58  ;;  %v616_v61 = vadd.f32 %v4450_v60, %v5335_v24  ;;  %v610_v62 = vpop.f32.mrb[51].mxu0  ;;  %v1978_v63 = vld [vmem:[#allocation2 + $0x160] sm:$0xff] }
 0x14d   :  { %792 = vst.msk [vmem:[#allocation2 + $0x180] sm:$0xff] %vm743_vm1, %v727_v59  ;;  %v611_v1 = vadd.f32 %v5335_v24, %v610_v62  ;;  %4583 = vmatprep.mubr.msk.f32.mxu1 %vm743_vm1, %v1978_v63 }
 0x14e   :  { %v730_v3 = vmax.f32 %v616_v61, 0.0  ;;  %4584 = vmatmul.mubr.msk.f32.vlgmr.msra.gmra.mrb[0].mxu1 %vm743_vm1, %v1979_v2  ;;  %v2538_v2 = vld [vmem:[%s6172_s3 + $0x58] sm:$0xff] }
 0x14f   :  { %v729_v4 = vmax.f32 %v611_v1, 0.0  ;;  %4696 = vmatpush3.bf16.msra.mxu1 %v4693_v45  ;;  %v4453_v5 = vpop.f32.mrb[52].mxu0  ;;  %v1981_v10 = vld [vmem:[#allocation2 + $0x178] sm:$0xff]  ;;  %v2536_v1 = vld [vmem:[%s6172_s3 + $0x48] sm:$0xff] }
 0x150   :  { %795 = vst.msk [vmem:[#allocation2 + $0x198] sm:$0xff] %vm743_vm1, %v730_v3  ;;  %v626_v6 = vadd.f32 %v4453_v5, %v5335_v24  ;;  %v620_v7 = vpop.f32.mrb[53].mxu0  ;;  %v1980_v8 = vld [vmem:[#allocation2 + $0x170] sm:$0xff]  ;;  %4698 = vmatprep.subr.bf16.mxu1 %v4697_v0  ;;  %v4709_v3 = vpack.c.bf16 %v2538_v2, %v2536_v1 }
 0x151   :  { %794 = vst.msk [vmem:[#allocation2 + $0x190] sm:$0xff] %vm743_vm1, %v729_v4  ;;  %v621_v9 = vadd.f32 %v5335_v24, %v620_v7  ;;  %4586 = vmatprep.mubr.msk.f32.mxu1 %vm743_vm1, %v1980_v8  ;;  %v2535_v4 = vld [vmem:[%s6172_s3 + $0x40] sm:$0xff]  ;;  %v2537_v5 = vld [vmem:[%s6172_s3 + $0x50] sm:$0xff]  ;;  %v2540_v7 = vld [vmem:[%s6172_s3 + $0x68] sm:$0xff] }
 0x152   :  { %v732_v13 = vmax.f32 %v626_v6, 0.0  ;;  %4587 = vmatmul.mubr.msk.f32.gmra.mrb[2].mxu1 %vm743_vm1, %v1981_v10  ;;  %v4711_v6 = vpack.c.bf16 %v2537_v5, %v2535_v4  ;;  %v2542_v8 = vld [vmem:[%s6172_s3 + $0x78] sm:$0xff]  ;;  %v2539_v10 = vld [vmem:[%s6172_s3 + $0x60] sm:$0xff] }
 0x153   :  { %v731_v14 = vmax.f32 %v621_v9, 0.0  ;;  %v4456_v15 = vpop.f32.mrb[54].mxu0  ;;  %v2086_v21 = vld [vmem:[#allocation2 + $0x188] sm:$0xff]  ;;  %v4713_v9 = vpack.c.bf16 %v2542_v8, %v2540_v7  ;;  %v4715_v12 = vpack.c.bf16 %v2541_v11, %v2539_v10  ;;  %v3891_v4 = vld [vmem:[%s6173_s4 + $0x38] sm:$0xff]  ;;  %v2694_v7 = vld [vmem:[%s6172_s3 + $0x90] sm:$0xff] }
 0x154   :  { %797 = vst.msk [vmem:[#allocation2 + $0x1a8] sm:$0xff] %vm743_vm1, %v732_v13  ;;  %v636_v16 = vadd.f32 %v4456_v15, %v5335_v24  ;;  %v630_v17 = vpop.f32.mrb[55].mxu0  ;;  %v2085_v18 = vld [vmem:[#allocation2 + $0x180] sm:$0xff]  ;;  %v2528_v13 = vld [vmem:[%s6172_s3 + $0x8] sm:$0xff] }
 0x155   :  { %796 = vst.msk [vmem:[#allocation2 + $0x1a0] sm:$0xff] %vm743_vm1, %v731_v14  ;;  %v631_v20 = vadd.f32 %v5335_v24, %v630_v17  ;;  %4593 = vmatprep.mubr.msk.f32.mxu1 %vm743_vm1, %v2085_v18  ;;  %v2530_v14 = vld [vmem:[%s6172_s3 + $0x18] sm:$0xff]  ;;  %v2697_v8 = vld [vmem:[%s6172_s3 + $0xa8] sm:$0xff]  ;;  %v3908_v10 = vld [vmem:[%s6173_s4 + $0xc0] sm:$0xff] }
 0x156   :  { %v734_v23 = vmax.f32 %v636_v16, 0.0  ;;  %4594 = vmatmul.mubr.msk.f32.vlgmr.msra.gmra.mrb[0].mxu1 %vm743_vm1, %v2086_v21  ;;  %v4717_v15 = vpack.c.bf16 %v2530_v14, %v2528_v13  ;;  %v4985_v16 = vmov 0.0   ;;  %v3909_v11 = vld [vmem:[%s6173_s4 + $0xc8] sm:$0xff]  ;;  %v2696_v14 = vld [vmem:[%s6172_s3 + $0xa0] sm:$0xff] }
 0x157   :  { %v733_v22 = vmax.f32 %v631_v20, 0.0  ;;  %4700 = vmatpush3.bf16.msra.mxu1 %v4697_v0  ;;  %v4459_v25 = vpop.f32.mrb[56].mxu0  ;;  %v2088_v30 = vld [vmem:[#allocation2 + $0x198] sm:$0xff] }
 0x158   :  { %799 = vst.msk [vmem:[#allocation2 + $0x1b8] sm:$0xff] %vm743_vm1, %v734_v23  ;;  %v646_v26 = vadd.f32 %v4459_v25, %v5335_v24  ;;  %v640_v27 = vpop.f32.mrb[57].mxu0  ;;  %v2087_v28 = vld [vmem:[#allocation2 + $0x190] sm:$0xff]  ;;  %4702 = vmatprep.subr.bf16.mxu1 %v4701_v19  ;;  %v5637_v23 = vld [vmem:[%s6174_s5 + $0x1] ss:$0 sm:$0xff] }
 0x159   :  { %798 = vst.msk [vmem:[#allocation2 + $0x1b0] sm:$0xff] %vm743_vm1, %v733_v22  ;;  %v641_v29 = vadd.f32 %v5335_v24, %v640_v27  ;;  %4596 = vmatprep.mubr.msk.f32.mxu1 %vm743_vm1, %v2087_v28  ;;  %v2527_v27 = vld [vmem:[%s6172_s3] sm:$0xff]  ;;  %v2529_v28 = vld [vmem:[%s6172_s3 + $0x10] sm:$0xff] }
 0x15a   :  { %v736_v33 = vmax.f32 %v646_v26, 0.0  ;;  %4597 = vmatmul.mubr.msk.f32.gmra.mrb[2].mxu1 %vm743_vm1, %v2088_v30  ;;  %v3901_v30 = vld [vmem:[%s6173_s4 + $0x88] sm:$0xff] }
 0x15b   :  { %v735_v34 = vmax.f32 %v641_v29, 0.0  ;;  %v4462_v35 = vpop.f32.mrb[58].mxu0  ;;  %v2193_v41 = vld [vmem:[#allocation2 + $0x1a8] sm:$0xff]  ;;  %v3900_v29 = vld [vmem:[%s6173_s4 + $0x80] sm:$0xff] }
 0x15c   :  { %801 = vst.msk [vmem:[#allocation2 + $0x1c8] sm:$0xff] %vm743_vm1, %v736_v33  ;;  %v656_v36 = vadd.f32 %v4462_v35, %v5335_v24  ;;  %v650_v37 = vpop.f32.mrb[59].mxu0  ;;  %v2192_v38 = vld [vmem:[#allocation2 + $0x1a0] sm:$0xff]  ;;  %v4837_v32 = vpack.c.bf16 %v3901_v30, %v3900_v29  ;;  %v3885_v33 = vld [vmem:[%s6173_s4 + $0x8] sm:$0xff]  ;;  %v3903_v35 = vld [vmem:[%s6173_s4 + $0x98] sm:$0xff] }
 0x15d   :  { %800 = vst.msk [vmem:[#allocation2 + $0x1c0] sm:$0xff] %vm743_vm1, %v735_v34  ;;  %v651_v40 = vadd.f32 %v5335_v24, %v650_v37  ;;  %4603 = vmatprep.mubr.msk.f32.mxu1 %vm743_vm1, %v2192_v38  ;;  %v3902_v34 = vld [vmem:[%s6173_s4 + $0x90] sm:$0xff]  ;;  %v2532_v38 = vld [vmem:[%s6172_s3 + $0x28] sm:$0xff] }
 0x15e   :  { %v738_v42 = vmax.f32 %v656_v36, 0.0  ;;  %4604 = vmatmul.mubr.msk.f32.vlgmr.msra.gmra.mrb[0].mxu1 %vm743_vm1, %v2193_v41  ;;  %v3886_v41 = vld [vmem:[%s6173_s4 + $0x10] sm:$0xff]  ;;  %4838 = vmatprep.subr.bf16.mxu0 %v4837_v32  ;;  %v3895_v32 = vld [vmem:[%s6173_s4 + $0x58] sm:$0xff] }
 0x15f   :  { %v737_v43 = vmax.f32 %v651_v40, 0.0  ;;  %4704 = vmatpush3.bf16.msra.mxu1 %v4701_v19  ;;  %v4465_v44 = vpop.f32.mrb[60].mxu0  ;;  %v2195_v49 = vld [vmem:[#allocation2 + $0x1b8] sm:$0xff]  ;;  %v4841_v40 = vpack.c.bf16 %v3903_v35, %v3902_v34  ;;  %v2776_v34 = vld [vmem:[%s6172_s3 + $0xc0] sm:$0xff]  ;;  %v2778_v35 = vld [vmem:[%s6172_s3 + $0xd0] sm:$0xff] }
 0x160   :  { %803 = vst.msk [vmem:[#allocation2 + $0x1d8] sm:$0xff] %vm743_vm1, %v738_v42  ;;  %v666_v45 = vadd.f32 %v4465_v44, %v5335_v24  ;;  %v660_v46 = vpop.f32.mrb[61].mxu0  ;;  %v2194_v47 = vld [vmem:[#allocation2 + $0x1b0] sm:$0xff]  ;;  %4706 = vmatprep.subr.bf16.mxu1 %v4705_v39  ;;  %v3887_v42 = vld [vmem:[%s6173_s4 + $0x18] sm:$0xff] }
 0x161   :  { %802 = vst.msk [vmem:[#allocation2 + $0x1d0] sm:$0xff] %vm743_vm1, %v737_v43  ;;  %v661_v48 = vadd.f32 %v5335_v24, %v660_v46  ;;  %4606 = vmatprep.mubr.msk.f32.mxu1 %vm743_vm1, %v2194_v47  ;;  %v3904_v46 = vld [vmem:[%s6173_s4 + $0xa0] sm:$0xff]  ;;  %v3905_v47 = vld [vmem:[%s6173_s4 + $0xa8] sm:$0xff] }
 0x162   :  { %v740_v50 = vmax.f32 %v666_v45, 0.0  ;;  %4607 = vmatmul.mubr.msk.f32.gmra.mrb[2].mxu1 %vm743_vm1, %v2195_v49  ;;  %v2534_v45 = vld [vmem:[%s6172_s3 + $0x38] sm:$0xff] }
 0x163   :  { %v739_v51 = vmax.f32 %v661_v48, 0.0  ;;  %v4468_v52 = vpop.f32.mrb[62].mxu0  ;;  %v2300_v57 = vld [vmem:[#allocation2 + $0x1c8] sm:$0xff] }
 0x164   :  { %805 = vst.msk [vmem:[#allocation2 + $0x1e8] sm:$0xff] %vm743_vm1, %v740_v50  ;;  %v676_v53 = vadd.f32 %v4468_v52, %v5335_v24  ;;  %v670_v54 = vpop.f32.mrb[63].mxu0  ;;  %v2299_v55 = vld [vmem:[#allocation2 + $0x1c0] sm:$0xff]  ;;  %v4843_v50 = vpack.c.bf16 %v3887_v42, %v3886_v41  ;;  %v4719_v52 = vpack.c.bf16 %v2529_v28, %v2527_v27  ;;  %v2779_v27 = vld [vmem:[%s6172_s3 + $0xd8] sm:$0xff]  ;;  %v4735_v41 = vpack.c.bf16 %v2778_v35, %v2776_v34 }
 0x165   :  { %804 = vst.msk [vmem:[#allocation2 + $0x1e0] sm:$0xff] %vm743_vm1, %v739_v51  ;;  %v671_v56 = vadd.f32 %v5335_v24, %v670_v54  ;;  %4613 = vmatprep.mubr.msk.f32.mxu1 %vm743_vm1, %v2299_v55  ;;  %v3888_v54 = vld [vmem:[%s6173_s4 + $0x20] sm:$0xff]  ;;  %v3889_v55 = vld [vmem:[%s6173_s4 + $0x28] sm:$0xff] }
 0x166   :  { %v742_v58 = vmax.f32 %v676_v53, 0.0  ;;  %4614 = vmatmul.mubr.msk.f32.vlgmr.msra.gmra.mrb[0].mxu1 %vm743_vm1, %v2300_v57  ;;  %v2531_v53 = vld [vmem:[%s6172_s3 + $0x20] sm:$0xff] }
 0x167   :  { %v741_v59 = vmax.f32 %v671_v56, 0.0  ;;  %4708 = vmatpush3.bf16.msra.mxu1 %v4705_v39  ;;  %v2302_v61 = vld [vmem:[#allocation2 + $0x1d8] sm:$0xff]  ;;  %v4839_v39 = vpack.c.bf16 %v3885_v33, %v3884_v31  ;;  %v3894_v31 = vld [vmem:[%s6173_s4 + $0x50] sm:$0xff] }
 0x168   :  { %807 = vst.msk [vmem:[#allocation2 + $0x1f8] sm:$0xff] %vm743_vm1, %v742_v58  ;;  %v2301_v60 = vld [vmem:[#allocation2 + $0x1d0] sm:$0xff]  ;;  %4710 = vmatprep.subr.bf16.mxu1 %v4709_v3  ;;  %v4721_v58 = vpack.c.bf16 %v2534_v45, %v2532_v38  ;;  %v3912_v38 = vld [vmem:[%s6173_s4 + $0xe0] sm:$0xff] }
 0x169   :  { %806 = vst.msk [vmem:[#allocation2 + $0x1f0] sm:$0xff] %vm743_vm1, %v741_v59  ;;  %4616 = vmatprep.mubr.msk.f32.mxu1 %vm743_vm1, %v2301_v60  ;;  %4840 = vmatpush3.bf16.msra.mxu0 %v4839_v39  ;;  %v2533_v59 = vld [vmem:[%s6172_s3 + $0x30] sm:$0xff]  ;;  %v4845_v60 = vpack.c.bf16 %v3905_v47, %v3904_v46  ;;  %v3913_v39 = vld [vmem:[%s6173_s4 + $0xe8] sm:$0xff] }
 0x16a   :  { %4617 = vmatmul.mubr.msk.f32.gmra.mrb[2].mxu1 %vm743_vm1, %v2302_v61  ;;  %4842 = vmatprep.subr.bf16.mxu0 %v4841_v40  ;;  %v3906_v61 = vld [vmem:[%s6173_s4 + $0xb0] sm:$0xff]  ;;  %v4723_v1 = vpack.c.bf16 %v2533_v59, %v2531_v53  ;;  %v4859_v40 = vpack.c.bf16 %v3895_v32, %v3894_v31  ;;  %v4861_v46 = vpack.c.bf16 %v3913_v39, %v3912_v38  ;;  %v2861_v47 = vld [vmem:[%s6172_s3 + $0x108] sm:$0xff]  ;;  %v2860_v53 = vld [vmem:[%s6172_s3 + $0x100] sm:$0xff] }
 0x16b   :  { %v2407_v24 = vld [vmem:[#allocation2 + $0x1e8] sm:$0xff]  ;;  %v3890_v3 = vld [vmem:[%s6173_s4 + $0x30] sm:$0xff] }
 0x16c   :  { %v2406_v62 = vld [vmem:[#allocation2 + $0x1e0] sm:$0xff]  ;;  %v2782_v45 = vld [vmem:[%s6172_s3 + $0xf0] sm:$0xff]  ;;  %v3117_v32 = vld [vmem:[%s6172_s3 + $0x1e8] sm:$0xff] }
 0x16d   :  { %4623 = vmatprep.mubr.msk.f32.mxu1 %vm743_vm1, %v2406_v62  ;;  %v3907_v62 = vld [vmem:[%s6173_s4 + $0xb8] sm:$0xff]  ;;  %4844 = vmatpush3.bf16.msra.mxu0 %v4843_v50  ;;  %v3114_v31 = vld [vmem:[%s6172_s3 + $0x1d0] sm:$0xff]  ;;  %v3197_v39 = vld [vmem:[%s6172_s3 + $0x208] sm:$0xff] }
 0x16e   :  { %4624 = vmatmul.mubr.msk.f32.vlgmr.msra.gmra.mrb[0].mxu1 %vm743_vm1, %v2407_v24  ;;  %v2693_v24 = vld [vmem:[%s6172_s3 + $0x88] sm:$0xff]  ;;  %v4849_v2 = vpack.c.bf16 %v3907_v62, %v3906_v61  ;;  %4846 = vmatprep.subr.bf16.mxu0 %v4845_v60  ;;  %v2864_v61 = vld [vmem:[%s6172_s3 + $0x120] sm:$0xff]  ;;  %v2866_v62 = vld [vmem:[%s6172_s3 + $0x130] sm:$0xff] }
 0x16f   :  { %v2409_v63 = vld [vmem:[#allocation2 + $0x1f8] sm:$0xff]  ;;  %4712 = vmatpush1.bf16.msra.mxu1 %v4711_v6  ;;  %v2692_v6 = vld [vmem:[%s6172_s3 + $0x80] sm:$0xff]  ;;  %v3118_v38 = vld [vmem:[%s6172_s3 + $0x1f0] sm:$0xff] }
 0x170   :  { %v2408_v0 = vld [vmem:[#allocation2 + $0x1f0] sm:$0xff]  ;;  %4714 = vmatprep.subr.bf16.mxu1 %v4713_v9  ;;  %v2699_v9 = vld [vmem:[%s6172_s3 + $0xb8] sm:$0xff]  ;;  %v4727_v13 = vpack.c.bf16 %v2694_v7, %v2692_v6  ;;  %v2948_v7 = vld [vmem:[%s6172_s3 + $0x160] sm:$0xff] }
 0x171   :  { %4626 = vmatprep.mubr.msk.f32.mxu1 %vm743_vm1, %v2408_v0  ;;  %v4847_v0 = vpack.c.bf16 %v3889_v55, %v3888_v54  ;;  %v2862_v54 = vld [vmem:[%s6172_s3 + $0x110] sm:$0xff]  ;;  %v2865_v55 = vld [vmem:[%s6172_s3 + $0x128] sm:$0xff] }
 0x172   :  { %4627 = vmatmul.mubr.msk.f32.gmra.mrb[2].mxu1 %vm743_vm1, %v2409_v63  ;;  %v2695_v63 = vld [vmem:[%s6172_s3 + $0x98] sm:$0xff] }
 0x173   :  { %4716 = vmatpush1.bf16.msra.mxu1 %v4715_v12  ;;  %2612 = vmatprep.mubr.f32.mxu1 %v4985_v16  ;;  %v4725_v5 = vpack.c.bf16 %v2695_v63, %v2693_v24  ;;  %v4851_v12 = vpack.c.bf16 %v3891_v4, %v3890_v3  ;;  %v2945_v24 = vld [vmem:[%s6172_s3 + $0x148] sm:$0xff]  ;;  %v2947_v63 = vld [vmem:[%s6172_s3 + $0x158] sm:$0xff]  ;;  %v2946_v3 = vld [vmem:[%s6172_s3 + $0x150] sm:$0xff] }
 0x174   :  { %4718 = vmatprep.subr.bf16.mxu1 %v4717_v15  ;;  %4848 = vmatpush3.bf16.msra.mxu0 %v4847_v0  ;;  %v3892_v15 = vld [vmem:[%s6173_s4 + $0x40] sm:$0xff]  ;;  %v2949_v4 = vld [vmem:[%s6172_s3 + $0x168] sm:$0xff] }
 0x175   :  { %4850 = vmatprep.subr.bf16.mxu0 %v4849_v2  ;;  %v2944_v2 = vld [vmem:[%s6172_s3 + $0x140] sm:$0xff] }
 0x178   :  { %4852 = vmatpush3.bf16.msra.mxu0 %v4851_v12 }
 0x1f1   :  { %v4515_v17 = vpop.f32.mrb[64].mxu0 }
 0x1f2   :  { %v1313_v18 = vpop.f32.mrb[65].mxu0 }
 0x1f5   :  { %v4518_v19 = vpop.f32.mrb[66].mxu0 }
 0x1f6   :  { %v1323_v20 = vpop.f32.mrb[67].mxu0 }
 0x241   :  { %v4625_v21 = vpop.f32.mrb[0].mxu1 }
 0x242   :  { %v5639_v22 = vadd.f32 %v4625_v21, %v4515_v17  ;;  %v2490_v25 = vpop.f32.mrb[1].mxu1  ;;  %v3893_v17 = vld [vmem:[%s6173_s4 + $0x48] sm:$0xff]  ;;  %v3910_v21 = vld [vmem:[%s6173_s4 + $0xd0] sm:$0xff] }
 0x243   :  { %v4870_v26 = vadd.f32 %v2490_v25, %v1313_v18  ;;  %v4729_v18 = vpack.c.bf16 %v2699_v9, %v2697_v8  ;;  %v3911_v25 = vld [vmem:[%s6173_s4 + $0xd8] sm:$0xff]  ;;  %v4855_v28 = vpack.c.bf16 %v3893_v17, %v3892_v15  ;;  %v2950_v8 = vld [vmem:[%s6172_s3 + $0x170] sm:$0xff]  ;;  %v3029_v9 = vld [vmem:[%s6172_s3 + $0x188] sm:$0xff] }
 0x244   :  { %v4857_v30 = vpack.c.bf16 %v3911_v25, %v3910_v21  ;;  %v2518_v0 = vadd.f32 %v5639_v22, %v5637_v23  ;;  %v3033_v15 = vld [vmem:[%s6172_s3 + $0x1a8] sm:$0xff]  ;;  %v3035_v17 = vld [vmem:[%s6172_s3 + $0x1b8] sm:$0xff]  ;;  %v3032_v21 = vld [vmem:[%s6172_s3 + $0x1a0] sm:$0xff] }
 0x245   :  { %v2517_v36 = vadd.f32 %v4870_v26, %v5637_v23  ;;  %v4628_v37 = vpop.f32.mrb[2].mxu1  ;;  %v2777_v26 = vld [vmem:[%s6172_s3 + $0xc8] sm:$0xff]  ;;  %v3034_v25 = vld [vmem:[%s6172_s3 + $0x1b0] sm:$0xff] }
 0x246   :  { %v4871_v43 = vadd.f32 %v4628_v37, %v4518_v19  ;;  %v2500_v44 = vpop.f32.mrb[3].mxu1  ;;  %v2698_v19 = vld [vmem:[%s6172_s3 + $0xb0] sm:$0xff]  ;;  %v4733_v33 = vpack.c.bf16 %v2779_v27, %v2777_v26  ;;  %v2783_v37 = vld [vmem:[%s6172_s3 + $0xf8] sm:$0xff]  ;;  %v5850_v22 = vmax.f32 %v2518_v0, 0.0  ;;  %v3113_v26 = vld [vmem:[%s6172_s3 + $0x1c8] sm:$0xff] }
 0x247   :  { %v5684_v48 = vmax.f32 %v2517_v36, 0.0  ;;  %v4872_v49 = vadd.f32 %v2500_v44, %v1323_v20  ;;  %v4853_v20 = vpack.c.bf16 %v3909_v11, %v3908_v10  ;;  %v4731_v29 = vpack.c.bf16 %v2698_v19, %v2696_v14  ;;  %v2781_v36 = vld [vmem:[%s6172_s3 + $0xe8] sm:$0xff]  ;;  %v2780_v44 = vld [vmem:[%s6172_s3 + $0xe0] sm:$0xff]  ;;  %v3031_v10 = vld [vmem:[%s6172_s3 + $0x198] sm:$0xff] }
 0x248   :  { %v5687_v51 = vadd.f32 %v4871_v43, %v5637_v23  ;;  %v4737_v43 = vpack.c.bf16 %v2783_v37, %v2781_v36  ;;  %v4739_v50 = vpack.c.bf16 %v2782_v45, %v2780_v44  ;;  %v4755_v11 = vpack.c.bf16 %v2950_v8, %v2948_v7  ;;  %v3030_v14 = vld [vmem:[%s6172_s3 + $0x190] sm:$0xff]  ;;  %v3115_v27 = vld [vmem:[%s6172_s3 + $0x1d8] sm:$0xff]  ;;  %v3116_v37 = vld [vmem:[%s6172_s3 + $0x1e0] sm:$0xff] }
 0x249   :  { %v2544_v56 = vrot.slane %v5684_v48, 2  ;;  %v5700_v57 = vadd.f32 %v4872_v49, %v5637_v23  ;;  %4854 = vmatprep.subr.bf16.mxu0 %v4853_v20  ;;  %v2700_v42 = vrot.slane %v5684_v48, 4  ;;  %v2863_v49 = vld [vmem:[%s6172_s3 + $0x118] sm:$0xff]  ;;  %v2784_v59 = vrot.slane %v5684_v48, 6  ;;  %v3198_v44 = vld [vmem:[%s6172_s3 + $0x210] sm:$0xff]  ;;  %v3201_v45 = vld [vmem:[%s6172_s3 + $0x228] sm:$0xff] }
 0x24a   :  { %4856 = vmatpush3.bf16.msra.mxu0 %v4855_v28  ;;  %v4751_v23 = vpack.c.bf16 %v2946_v3, %v2944_v2  ;;  %v4757_v12 = vpack.c.bf16 %v3031_v10, %v3029_v9  ;;  %v2952_v19 = vrot.slane %v5850_v22, 2  ;;  %v4761_v20 = vpack.c.bf16 %v3035_v17, %v3033_v15  ;;  %v3284_v0 = vld [vmem:[%s6172_s3 + $0x260] sm:$0xff]  ;;  %v3365_v2 = vld [vmem:[%s6172_s3 + $0x288] sm:$0xff]  ;;  %v3367_v3 = vld [vmem:[%s6172_s3 + $0x298] sm:$0xff] }
 0x24b   :  { %4137 = vmatmul.mubr.msk.f32.vlgmr.msra.gmra.mrb[4].mxu1 %vm2545_vm2, %v2544_v56  ;;  %4858 = vmatprep.subr.bf16.mxu0 %v4857_v30  ;;  %v2867_v56 = vld [vmem:[%s6172_s3 + $0x138] sm:$0xff]  ;;  %v4763_v28 = vpack.c.bf16 %v3034_v25, %v3032_v21  ;;  %v3112_v30 = vld [vmem:[%s6172_s3 + $0x1c0] sm:$0xff]  ;;  %v3036_v35 = vrot.slane %v5850_v22, 4 }
 0x24c   :  { %4720 = vmatpush1.bf16.msra.mxu1 %v4719_v52  ;;  %2685 = vmatprep.mubr.f32.mxu1 %v4985_v16  ;;  %v4741_v52 = vpack.c.bf16 %v2863_v49, %v2861_v47  ;;  %v4745_v60 = vpack.c.bf16 %v2867_v56, %v2865_v55  ;;  %v4767_v34 = vpack.c.bf16 %v3114_v31, %v3112_v30  ;;  %v3120_v49 = vrot.slane %v5850_v22, 6  ;;  %v3283_v55 = vld [vmem:[%s6172_s3 + $0x258] sm:$0xff]  ;;  %v3368_v10 = vld [vmem:[%s6172_s3 + $0x2a0] sm:$0xff] }
 0x24d   :  { %4722 = vmatprep.subr.bf16.mxu1 %v4721_v58  ;;  %v4743_v58 = vpack.c.bf16 %v2862_v54, %v2860_v53  ;;  %v3202_v53 = vld [vmem:[%s6172_s3 + $0x230] sm:$0xff]  ;;  %v3281_v54 = vld [vmem:[%s6172_s3 + $0x248] sm:$0xff]  ;;  %v3448_v17 = vld [vmem:[%s6172_s3 + $0x2c0] sm:$0xff] }
 0x24e   :  { %4860 = vmatpush3.bf16.msra.mxu0 %v4859_v40  ;;  %v3199_v40 = vld [vmem:[%s6172_s3 + $0x218] sm:$0xff] }
 0x24f   :  { %4862 = vmatprep.subr.bf16.mxu0 %v4861_v46  ;;  %v3203_v46 = vld [vmem:[%s6172_s3 + $0x238] sm:$0xff] }
 0x250   :  { %4724 = vmatpush1.bf16.msra.mxu1 %v4723_v1  ;;  %v4749_v1 = vpack.c.bf16 %v2947_v63, %v2945_v24  ;;  %v5961_v63 = vmax.f32 %v5700_v57, 0.0  ;;  %v3535_v30 = vld [vmem:[%s6172_s3 + $0x318] sm:$0xff] }
 0x251   :  { %4726 = vmatprep.subr.bf16.mxu1 %v4725_v5  ;;  %v2951_v5 = vld [vmem:[%s6172_s3 + $0x178] sm:$0xff] }
 0x252   :  { %v4753_v6 = vpack.c.bf16 %v2951_v5, %v2949_v4  ;;  %v4789_v4 = vpack.c.bf16 %v3367_v3, %v3365_v2  ;;  %v3364_v5 = vld [vmem:[%s6172_s3 + $0x280] sm:$0xff]  ;;  %v3288_v8 = vrot.slane %v5961_v63, 2  ;;  %v3372_v25 = vrot.slane %v5961_v63, 4  ;;  %v3706_v3 = vld [vmem:[%s6172_s3 + $0x3b0] sm:$0xff] }
 0x253   :  { %4138 = vmatmul.mubr.msk.f32.vlgmr.msra.gmra.mrb[4].mxu1 %vm2545_vm2, %v5684_v48  ;;  %v4747_v48 = vpack.c.bf16 %v2866_v62, %v2864_v61  ;;  %v3285_v61 = vld [vmem:[%s6172_s3 + $0x268] sm:$0xff]  ;;  %v3287_v62 = vld [vmem:[%s6172_s3 + $0x278] sm:$0xff]  ;;  %v3704_v2 = vld [vmem:[%s6172_s3 + $0x3a0] sm:$0xff] }
 0x254   :  { %4728 = vmatpush1.bf16.msra.mxu1 %v4727_v13  ;;  %2767 = vmatprep.mubr.f32.mxu1 %v4985_v16  ;;  %v3028_v13 = vld [vmem:[%s6172_s3 + $0x180] sm:$0xff] }
 0x255   :  { %4730 = vmatprep.subr.bf16.mxu1 %v4729_v18  ;;  %v4759_v18 = vpack.c.bf16 %v3030_v14, %v3028_v13  ;;  %v3451_v13 = vld [vmem:[%s6172_s3 + $0x2d8] sm:$0xff] }
 0x258   :  { %4732 = vmatpush1.bf16.msra.mxu1 %v4731_v29  ;;  %v4765_v29 = vpack.c.bf16 %v3115_v27, %v3113_v26  ;;  %v3452_v27 = vld [vmem:[%s6172_s3 + $0x2e0] sm:$0xff] }
 0x259   :  { %4734 = vmatprep.subr.bf16.mxu1 %v4733_v33  ;;  %v3119_v33 = vld [vmem:[%s6172_s3 + $0x1f8] sm:$0xff] }
 0x25a   :  { %v4769_v36 = vpack.c.bf16 %v3119_v33, %v3117_v32  ;;  %v3532_v33 = vld [vmem:[%s6172_s3 + $0x300] sm:$0xff] }
 0x25b   :  { %4139 = vmatmul.mubr.msk.f32.vlgmr.msra.gmra.mrb[4].mxu1 %vm2545_vm2, %v2700_v42  ;;  %v4773_v42 = vpack.c.bf16 %v3199_v40, %v3197_v39  ;;  %v3536_v40 = vld [vmem:[%s6172_s3 + $0x320] sm:$0xff] }
 0x25c   :  { %4736 = vmatpush1.bf16.msra.mxu1 %v4735_v41  ;;  %2851 = vmatprep.mubr.f32.mxu1 %v4985_v16  ;;  %v4771_v41 = vpack.c.bf16 %v3118_v38, %v3116_v37  ;;  %v3456_v38 = vrot.slane %v5961_v63, 6 }
 0x25d   :  { %4738 = vmatprep.subr.bf16.mxu1 %v4737_v43  ;;  %v3196_v43 = vld [vmem:[%s6172_s3 + $0x200] sm:$0xff] }
 0x25e   :  { %v4775_v47 = vpack.c.bf16 %v3198_v44, %v3196_v43  ;;  %v3619_v43 = vld [vmem:[%s6172_s3 + $0x358] sm:$0xff] }
 0x260   :  { %4740 = vmatpush1.bf16.msra.mxu1 %v4739_v50  ;;  %v4777_v50 = vpack.c.bf16 %v3203_v46, %v3201_v45  ;;  %v3616_v46 = vld [vmem:[%s6172_s3 + $0x340] sm:$0xff] }
 0x261   :  { %4742 = vmatprep.subr.bf16.mxu1 %v4741_v52  ;;  %v3200_v52 = vld [vmem:[%s6172_s3 + $0x220] sm:$0xff] }
 0x262   :  { %v4779_v56 = vpack.c.bf16 %v3202_v53, %v3200_v52  ;;  %v2524_v53 = vmax.f32 %v5687_v51, 0.0 }
 0x263   :  { %4140 = vmatmul.mubr.msk.f32.vlgmr.msra.gmra.mrb[4].mxu1 %vm2545_vm2, %v2784_v59  ;;  %v3280_v59 = vld [vmem:[%s6172_s3 + $0x240] sm:$0xff] }
 0x264   :  { %4744 = vmatpush1.bf16.msra.mxu1 %v4743_v58  ;;  %2935 = vmatprep.mubr.f32.mxu1 %v4985_v16  ;;  %v4781_v58 = vpack.c.bf16 %v3283_v55, %v3281_v54  ;;  %v3620_v55 = vld [vmem:[%s6172_s3 + $0x360] sm:$0xff] }
 0x265   :  { %4746 = vmatprep.subr.bf16.mxu1 %v4745_v60  ;;  %v3282_v60 = vld [vmem:[%s6172_s3 + $0x250] sm:$0xff] }
 0x266   :  { %v4783_v24 = vpack.c.bf16 %v3282_v60, %v3280_v59  ;;  %v3703_v59 = vld [vmem:[%s6172_s3 + $0x398] sm:$0xff] }
 0x268   :  { %4748 = vmatpush1.bf16.msra.mxu1 %v4747_v48  ;;  %v4785_v48 = vpack.c.bf16 %v3287_v62, %v3285_v61  ;;  %v3700_v61 = vld [vmem:[%s6172_s3 + $0x380] sm:$0xff]  ;;  %v3702_v62 = vld [vmem:[%s6172_s3 + $0x390] sm:$0xff] }
 0x269   :  { %4750 = vmatprep.subr.bf16.mxu1 %v4749_v1  ;;  %v3286_v1 = vld [vmem:[%s6172_s3 + $0x270] sm:$0xff] }
 0x26a   :  { %v4787_v57 = vpack.c.bf16 %v3286_v1, %v3284_v0  ;;  %v3624_v0 = vrot.slane %v2524_v53, 2 }
 0x26b   :  { %4141 = vmatmul.mubr.msk.f32.vlgmr.msra.gmra.mrb[4].mxu1 %vm2545_vm2, %v5850_v22  ;;  %v3369_v22 = vld [vmem:[%s6172_s3 + $0x2a8] sm:$0xff] }
 0x26c   :  { %4752 = vmatpush1.bf16.msra.mxu1 %v4751_v23  ;;  %3019 = vmatprep.mubr.f32.mxu1 %v4985_v16  ;;  %v3366_v23 = vld [vmem:[%s6172_s3 + $0x290] sm:$0xff] }
 0x26d   :  { %4754 = vmatprep.subr.bf16.mxu1 %v4753_v6  ;;  %v3371_v6 = vld [vmem:[%s6172_s3 + $0x2b8] sm:$0xff]  ;;  %v4791_v7 = vpack.c.bf16 %v3366_v23, %v3364_v5  ;;  %v4827_v5 = vpack.c.bf16 %v3706_v3, %v3704_v2 }
 0x26e   :  { %v4793_v9 = vpack.c.bf16 %v3371_v6, %v3369_v22  ;;  %v3784_v22 = vld [vmem:[%s6172_s3 + $0x3c0] sm:$0xff]  ;;  %v3786_v6 = vld [vmem:[%s6172_s3 + $0x3d0] sm:$0xff] }
 0x270   :  { %4756 = vmatpush1.bf16.msra.mxu1 %v4755_v11  ;;  %v3370_v11 = vld [vmem:[%s6172_s3 + $0x2b0] sm:$0xff] }
 0x271   :  { %4758 = vmatprep.subr.bf16.mxu1 %v4757_v12  ;;  %v3449_v12 = vld [vmem:[%s6172_s3 + $0x2c8] sm:$0xff]  ;;  %v4795_v14 = vpack.c.bf16 %v3370_v11, %v3368_v10  ;;  %v3708_v10 = vrot.slane %v2524_v53, 4 }
 0x272   :  { %v4797_v15 = vpack.c.bf16 %v3451_v13, %v3449_v12  ;;  %v3788_v12 = vld [vmem:[%s6172_s3 + $0x3e0] sm:$0xff]  ;;  %v3790_v13 = vld [vmem:[%s6172_s3 + $0x3f0] sm:$0xff] }
 0x273   :  { %4142 = vmatmul.mubr.msk.f32.vlgmr.msra.gmra.mrb[4].mxu1 %vm2545_vm2, %v2952_v19  ;;  %v3453_v19 = vld [vmem:[%s6172_s3 + $0x2e8] sm:$0xff] }
 0x274   :  { %4760 = vmatpush1.bf16.msra.mxu1 %v4759_v18  ;;  %3103 = vmatprep.mubr.f32.mxu1 %v4985_v16  ;;  %v3450_v18 = vld [vmem:[%s6172_s3 + $0x2d0] sm:$0xff] }
 0x275   :  { %4762 = vmatprep.subr.bf16.mxu1 %v4761_v20  ;;  %v3455_v20 = vld [vmem:[%s6172_s3 + $0x2f8] sm:$0xff]  ;;  %v4799_v21 = vpack.c.bf16 %v3450_v18, %v3448_v17  ;;  %v3896_v17 = vld [vmem:[%s6173_s4 + $0x60] sm:$0xff]  ;;  %v3897_v18 = vld [vmem:[%s6173_s4 + $0x68] sm:$0xff] }
 0x276   :  { %v4801_v26 = vpack.c.bf16 %v3455_v20, %v3453_v19  ;;  %v4863_v19 = vpack.c.bf16 %v3897_v18, %v3896_v17  ;;  %v3914_v20 = vld [vmem:[%s6173_s4 + $0xf0] sm:$0xff] }
 0x278   :  { %4764 = vmatpush1.bf16.msra.mxu1 %v4763_v28  ;;  %v3454_v28 = vld [vmem:[%s6172_s3 + $0x2f0] sm:$0xff]  ;;  %4864 = vmatpush3.bf16.msra.mxu0 %v4863_v19 }
 0x279   :  { %4766 = vmatprep.subr.bf16.mxu1 %v4765_v29  ;;  %v3533_v29 = vld [vmem:[%s6172_s3 + $0x308] sm:$0xff]  ;;  %v4803_v31 = vpack.c.bf16 %v3454_v28, %v3452_v27  ;;  %v3869_v28 = vlaneseq }
 0x27a   :  { %v4805_v32 = vpack.c.bf16 %v3535_v30, %v3533_v29 }
 0x27b   :  { %4143 = vmatmul.mubr.msk.f32.vlgmr.msra.gmra.mrb[4].mxu1 %vm2545_vm2, %v3036_v35  ;;  %v3537_v35 = vld [vmem:[%s6172_s3 + $0x328] sm:$0xff]  ;;  %v3870_v29 = vshrl.u32 %v3869_v28, 7 }
 0x27c   :  { %4768 = vmatpush1.bf16.msra.mxu1 %v4767_v34  ;;  %3187 = vmatprep.mubr.f32.mxu1 %v4985_v16  ;;  %v3534_v34 = vld [vmem:[%s6172_s3 + $0x310] sm:$0xff] }
 0x27d   :  { %4770 = vmatprep.subr.bf16.mxu1 %v4769_v36  ;;  %v3539_v36 = vld [vmem:[%s6172_s3 + $0x338] sm:$0xff]  ;;  %v4807_v37 = vpack.c.bf16 %v3534_v34, %v3532_v33  ;;  %v3871_v30 = vsub.s32 0, %v3870_v29 }
 0x27e   :  { %v4809_v39 = vpack.c.bf16 %v3539_v36, %v3537_v35 }
 0x280   :  { %4772 = vmatpush1.bf16.msra.mxu1 %v4771_v41  ;;  %v3538_v41 = vld [vmem:[%s6172_s3 + $0x330] sm:$0xff] }
 0x281   :  { %4774 = vmatprep.subr.bf16.mxu1 %v4773_v42  ;;  %v3617_v42 = vld [vmem:[%s6172_s3 + $0x348] sm:$0xff]  ;;  %v4811_v44 = vpack.c.bf16 %v3538_v41, %v3536_v40 }
 0x282   :  { %v4813_v45 = vpack.c.bf16 %v3619_v43, %v3617_v42  ;;  %v4153_v42 = vld [vmem:[%s6174_s5 + $0x3] ss:$0 sm:$0xff] }
 0x283   :  { %4144 = vmatmul.mubr.msk.f32.vlgmr.msra.gmra.mrb[4].mxu1 %vm2545_vm2, %v3120_v49  ;;  %v3621_v49 = vld [vmem:[%s6172_s3 + $0x368] sm:$0xff] }
 0x284   :  { %4776 = vmatpush1.bf16.msra.mxu1 %v4775_v47  ;;  %3271 = vmatprep.mubr.f32.mxu1 %v4985_v16  ;;  %v3618_v47 = vld [vmem:[%s6172_s3 + $0x350] sm:$0xff] }
 0x285   :  { %4778 = vmatprep.subr.bf16.mxu1 %v4777_v50  ;;  %v3623_v50 = vld [vmem:[%s6172_s3 + $0x378] sm:$0xff]  ;;  %v4815_v52 = vpack.c.bf16 %v3618_v47, %v3616_v46 }
 0x286   :  { %v4817_v54 = vpack.c.bf16 %v3623_v50, %v3621_v49 }
 0x288   :  { %4780 = vmatpush1.bf16.msra.mxu1 %v4779_v56  ;;  %v3622_v56 = vld [vmem:[%s6172_s3 + $0x370] sm:$0xff] }
 0x289   :  { %4782 = vmatprep.subr.bf16.mxu1 %v4781_v58  ;;  %v3701_v58 = vld [vmem:[%s6172_s3 + $0x388] sm:$0xff]  ;;  %v4819_v51 = vpack.c.bf16 %v3622_v56, %v3620_v55 }
 0x28a   :  { %v4821_v60 = vpack.c.bf16 %v3703_v59, %v3701_v58 }
 0x28b   :  { %4145 = vmatmul.mubr.msk.f32.vlgmr.msra.gmra.mrb[4].mxu1 %vm2545_vm2, %v5961_v63  ;;  %v3707_v63 = vld [vmem:[%s6172_s3 + $0x3b8] sm:$0xff] }
 0x28c   :  { %4784 = vmatpush1.bf16.msra.mxu1 %v4783_v24  ;;  %3355 = vmatprep.mubr.f32.mxu1 %v4985_v16  ;;  %v3705_v24 = vld [vmem:[%s6172_s3 + $0x3a8] sm:$0xff] }
 0x28d   :  { %4786 = vmatprep.subr.bf16.mxu1 %v4785_v48  ;;  %v4823_v48 = vpack.c.bf16 %v3702_v62, %v3700_v61  ;;  %v4825_v1 = vpack.c.bf16 %v3707_v63, %v3705_v24 }
 0x290   :  { %4788 = vmatpush1.bf16.msra.mxu1 %v4787_v57  ;;  %v3785_v57 = vld [vmem:[%s6172_s3 + $0x3c8] sm:$0xff] }
 0x291   :  { %4790 = vmatprep.subr.bf16.mxu1 %v4789_v4  ;;  %v3787_v4 = vld [vmem:[%s6172_s3 + $0x3d8] sm:$0xff] }
 0x292   :  { %v4829_v23 = vpack.c.bf16 %v3787_v4, %v3785_v57 }
 0x293   :  { %4146 = vmatmul.mubr.msk.f32.vlgmr.msra.gmra.mrb[4].mxu1 %vm2545_vm2, %v3288_v8  ;;  %v3791_v8 = vld [vmem:[%s6172_s3 + $0x3f8] sm:$0xff] }
 0x294   :  { %4792 = vmatpush1.bf16.msra.mxu1 %v4791_v7  ;;  %3439 = vmatprep.mubr.f32.mxu1 %v4985_v16  ;;  %v3789_v7 = vld [vmem:[%s6172_s3 + $0x3e8] sm:$0xff] }
 0x295   :  { %4794 = vmatprep.subr.bf16.mxu1 %v4793_v9  ;;  %v4831_v9 = vpack.c.bf16 %v3786_v6, %v3784_v22  ;;  %v4833_v11 = vpack.c.bf16 %v3791_v8, %v3789_v7 }
 0x298   :  { %4796 = vmatpush1.bf16.msra.mxu1 %v4795_v14  ;;  %v4835_v14 = vpack.c.bf16 %v3790_v13, %v3788_v12 }
 0x299   :  { %4798 = vmatprep.subr.bf16.mxu1 %v4797_v15  ;;  %v3792_v15 = vrot.slane %v2524_v53, 6 }
 0x29b   :  { %4147 = vmatmul.mubr.msk.f32.vlgmr.msra.gmra.mrb[4].mxu1 %vm2545_vm2, %v3372_v25  ;;  %v3898_v25 = vld [vmem:[%s6173_s4 + $0x70] sm:$0xff] }
 0x29c   :  { %4800 = vmatpush1.bf16.msra.mxu1 %v4799_v21  ;;  %3523 = vmatprep.mubr.f32.mxu1 %v4985_v16 }
 0x29d   :  { %4802 = vmatprep.subr.bf16.mxu1 %v4801_v26  ;;  %v3899_v26 = vld [vmem:[%s6173_s4 + $0x78] sm:$0xff] }
 0x29e   :  { %v4867_v27 = vpack.c.bf16 %v3899_v26, %v3898_v25 }
 0x2a0   :  { %4804 = vmatpush1.bf16.msra.mxu1 %v4803_v31  ;;  %v4136_v31 = vld [vmem:[%s6174_s5 + $0x2] ss:$4 sm:$0x3] }
 0x2a1   :  { %4806 = vmatprep.subr.bf16.mxu1 %v4805_v32  ;;  %v3875_v32 = vsub.s32 1, %v3870_v29  ;;  %v3872_v33 = vrot.slane %v4136_v31, %v3871_v30 }
 0x2a3   :  { %4148 = vmatmul.mubr.msk.f32.vlgmr.msra.gmra.mrb[4].mxu1 %vm2545_vm2, %v3456_v38  ;;  %v3876_v34 = vrot.slane %v4136_v31, %v3875_v32 }
 0x2a4   :  { %4808 = vmatpush1.bf16.msra.mxu1 %v4807_v37  ;;  %3607 = vmatprep.mubr.f32.mxu1 %v4985_v16 }
 0x2a5   :  { %4810 = vmatprep.subr.bf16.mxu1 %v4809_v39 }
 0x2a8   :  { %4812 = vmatpush1.bf16.msra.mxu1 %v4811_v44 }
 0x2a9   :  { %4814 = vmatprep.subr.bf16.mxu1 %v4813_v45 }
 0x2ab   :  { %4149 = vmatmul.mubr.msk.f32.vlgmr.msra.gmra.mrb[4].mxu1 %vm2545_vm2, %v2524_v53 }
 0x2ac   :  { %4816 = vmatpush1.bf16.msra.mxu1 %v4815_v52  ;;  %3691 = vmatprep.mubr.f32.mxu1 %v4985_v16 }
 0x2ad   :  { %4818 = vmatprep.subr.bf16.mxu1 %v4817_v54 }
 0x2b0   :  { %4820 = vmatpush1.bf16.msra.mxu1 %v4819_v51 }
 0x2b1   :  { %4822 = vmatprep.subr.bf16.mxu1 %v4821_v60 }
 0x2b3   :  { %4150 = vmatmul.mubr.msk.f32.vlgmr.msra.gmra.mrb[4].mxu1 %vm2545_vm2, %v3624_v0 }
 0x2b4   :  { %4824 = vmatpush1.bf16.msra.mxu1 %v4823_v48  ;;  %3775 = vmatprep.mubr.f32.mxu1 %v4985_v16 }
 0x2b5   :  { %4826 = vmatprep.subr.bf16.mxu1 %v4825_v1 }
 0x2b8   :  { %4828 = vmatpush1.bf16.msra.mxu1 %v4827_v5 }
 0x2b9   :  { %4830 = vmatprep.subr.bf16.mxu1 %v4829_v23 }
 0x2bb   :  { %4151 = vmatmul.mubr.msk.f32.vlgmr.msra.gmra.mrb[4].mxu1 %vm2545_vm2, %v3708_v10 }
 0x2bc   :  { %4832 = vmatpush1.bf16.msra.mxu1 %v4831_v9  ;;  %3859 = vmatprep.mubr.f32.mxu1 %v4985_v16  ;;  %v3915_v16 = vld [vmem:[%s6173_s4 + $0xf8] sm:$0xff] }
 0x2bd   :  { %4834 = vmatprep.subr.bf16.mxu1 %v4833_v11  ;;  %v4865_v21 = vpack.c.bf16 %v3915_v16, %v3914_v20 }
 0x2bf   :  { %4866 = vmatprep.subr.bf16.mxu0 %v4865_v21 }
 0x2c0   :  { %4836 = vmatpush1.bf16.msra.mxu1 %v4835_v14  ;;  %4868 = vmatpush3.bf16.msra.mxu0 %v4867_v27 }
 0x2c3   :  { %4152 = vmatmul.mubr.msk.f32.vlgmr.msra.gmra.mrb[4].mxu1 %vm2545_vm2, %v3792_v15 }
 0x396   :  { %v3861_v35 = vpop.f32.mrb[4].mxu1 }
 0x397   :  { %v3879_v36 = vadd.f32 %v3872_v33, %v3861_v35  ;;  %v3863_v37 = vpop.f32.mrb[5].mxu1 }
 0x398   :  { %v3880_v38 = vadd.f32 %v3876_v34, %v3863_v37 }
 0x399   :  { %v3881_v40 = vmax.f32 %v3879_v36, 0.0 }
 0x39a   :  { %v3882_v39 = vmax.f32 %v3880_v38, 0.0 }
 0x39c   :  { %3984 = vmatprep.mubr.f32.mxu0 %v3882_v39 }
 0x39d   :  { %3985 = vmatmul.mubr.f32.vlgmr.msra.gmra.mrb[68].mxu0 %v3881_v40 }
 0x470   :  { %v4354_v41 = vpop.f32.mrb[68].mxu0 }
 0x471   :  { %v4355_v43 = vpop.f32.mrb[69].mxu0 }
 0x472   :  { %v4356_v44 = vadd.f32 %v4355_v43, %v4354_v41 }
 0x474   :  { %v3987_v45 = vadd.f32 %v4356_v44, %v4153_v42 }
 0x476   :  { %3991 = vst.msk [vmem:[#allocation3] sm:$0x3] %vm3990_vm3, %v3987_v45 }
 0x477   :  { %4972 = shalt.err (!%p4969_p4)
}
 0x478   :  { %s4973_s8 = scalar_lea.hbm %s6175_s6, 32 }
 0x479   :  { %p4974_p5 = scmp.ne.s32.totalorder %s6175_s6, %s4973_s8  ;;  %p4977_p6 = scmp.lt.u32.totalorder %s4973_s8, %s6175_s6 }
 0x47b   :  { %p4979_p7 = pnand %p4977_p6, %p4974_p5 }
 0x47d   :  { %4982 = shalt.err (!%p4979_p7)
}
 0x47e   :  { %4001 = dma.vmem_to_hbm [thread:$0]  %s3999_s29, 32, %s6175_s6, [#allocation4]  }
 0x47f   :  { %4983 = dma.done.wait [#allocation4], 32  }
 0x480   :  { %4984 = vsyncadd [#allocation4], 4294967264 }
 0x481   :  { %4005 = vsyncpa [#allocation4], 1 }

</bundles_post_ra>
